<compile_context>
chip_gen: v7x
topology: tpu7x:2x2x1
jax: 0.10.0
libtpu: 0.0.40
codegen_flags: <defaults>
</compile_context>

<pallas_src>
import functools
import math

import numpy as np
import jax
import jax.numpy as jnp
from jax import lax
from jax.experimental import pallas as pl
from jax.experimental.pallas import tpu as pltpu

# MXU input dtype.  jnp.float32 keeps exact reference numerics at these toy
# sizes; set to jnp.bfloat16 at production sizes for MXU-native throughput
# (accumulation stays f32 via preferred_element_type; softmax/LN stay f32).
COMPUTE_DTYPE = jnp.float32


def _layernorm(x, eps=1e-5):
    # Fresh nn.LayerNorm (weight=1, bias=0) => pure normalization.
    mu = jnp.mean(x, axis=-1, keepdims=True)
    var = jnp.mean((x - mu) ** 2, axis=-1, keepdims=True)
    return (x - mu) * lax.rsqrt(var + eps)


def encoder_stack_kernel(x_ref, pad_ref,
                         wq_ref, bq_ref, wk_ref, bk_ref, wv_ref, bv_ref,
                         wo_ref, bo_ref, w1_ref, b1_ref, w2_ref, b2_ref,
                         xout_ref, attn_ref,
                         *, batch, seq, d_k, compute_dtype):
    """One grid step == one full encoder layer over the whole batch.

    The activation lives in the constant-index output block, so it stays
    resident in VMEM for the whole layer stack (no per-layer HBM round trip).
    """
    layer = pl.program_id(0)

    @pl.when(layer == 0)
    def _():
        # Seed the resident activation from the embedded input once.
        xout_ref[...] = x_ref[...]

    x = xout_ref[...]                      # (B*S, D) f32, VMEM-resident
    pad = pad_ref[...]                     # (B, 1, S) f32, 1.0 where token == 0
    cd = compute_dtype

    def linear(a, w_ref, b_ref):
        # (rows, K) @ (K, N) on the MXU with f32 accumulation; weights were
        # pre-cast to `cd` outside the kernel, bias-add stays f32.
        return jnp.dot(a.astype(cd), w_ref[0],
                       preferred_element_type=jnp.float32) + b_ref[0]

    # ---- MultiHeadAttention (reference never reshapes into heads) ----
    q = linear(x, wq_ref, bq_ref)          # (B*S, H)
    k = linear(x, wk_ref, bk_ref)
    v = linear(x, wv_ref, bv_ref)

    h_dim = q.shape[-1]
    q3 = q.reshape(batch, seq, h_dim)      # layout no-op: splits sublane dim
    k3 = k.reshape(batch, seq, h_dim)
    v3 = v.reshape(batch, seq, h_dim)

    # scores[b,i,j] = sum_h q[b,i,h] * k[b,j,h]  -- no transposed copy of k.
    scale = 1.0 / math.sqrt(float(d_k))    # compile-time constant multiply
    scores = jnp.einsum('bqh,bkh->bqk', q3.astype(cd), k3.astype(cd),
                        preferred_element_type=jnp.float32) * scale
    # torch: attention_scores.masked_fill_(attn_mask, 1e-09)  (VALUE, not -inf)
    scores = jnp.where(pad > 0.5, jnp.float32(1e-9), scores)

    # softmax over keys (numerically stable, f32)
    scores = scores - jnp.max(scores, axis=-1, keepdims=True)
    e = jnp.exp(scores)
    attn = e / jnp.sum(e, axis=-1, keepdims=True)           # (B, S, S) f32

    ctx3 = jnp.einsum('bqk,bkh->bqh', attn.astype(cd), v3.astype(cd),
                      preferred_element_type=jnp.float32)
    # reference: `context += q`, where `q` is the *unprojected* layer input.
    ctx = ctx3.reshape(batch * seq, h_dim) + x

    h = _layernorm(linear(ctx, wo_ref, bo_ref))

    # ---- FeedForwardNet: LayerNorm(ReLU(h W1 + b1) W2 + b2 + h) ----
    hid = jnp.maximum(linear(h, w1_ref, b1_ref), 0.0)
    ffn = linear(hid, w2_ref, b2_ref)
    xout_ref[...] = _layernorm(ffn + h)
    attn_ref[0] = attn


def _padded_block_bytes(shape, dtype):
    """Bytes of a block after (8, 128) tile padding — for explicit VMEM budgeting."""
    s = list(shape)
    if len(s) >= 2:
        s[-2] = -(-s[-2] // 8) * 8
    s[-1] = -(-s[-1] // 128) * 128
    return int(np.prod(s)) * np.dtype(dtype).itemsize


def encoder_stack(x, pad, stacked_params, *, d_k, compute_dtype=COMPUTE_DTYPE):
    """Runs the full n_layers encoder stack in a single pallas_call."""
    B, S, D = x.shape
    L = stacked_params[0].shape[0]
    BS = B * S

    x2d = x.reshape(BS, D)                 # row-dense activation slab
    pad3 = pad.reshape(B, 1, S)            # O(S) mask vector, broadcast in-kernel

    # Pre-cast weights ONCE outside the kernel (even indices are weights,
    # odd are biases); halves weight HBM traffic in bf16 mode and keeps
    # per-iteration casts off the VPU.  Biases stay f32 (post-accum add).
    params = [p.astype(compute_dtype) if i % 2 == 0 else p
              for i, p in enumerate(stacked_params)]

    def wspec(p):
        # One layer's slab per grid step; Pallas double-buffers, so layer
        # l+1's weights prefetch from HBM while layer l computes.
        return pl.BlockSpec((1,) + p.shape[1:], lambda l: (l, 0, 0))

    in_specs = ([pl.BlockSpec((BS, D), lambda l: (0, 0)),       # x (read at layer 0)
                 pl.BlockSpec((B, 1, S), lambda l: (0, 0, 0))]  # padding vector
                + [wspec(p) for p in params])
    out_specs = [
        # Constant block index over the layer axis => activation stays
        # resident in VMEM; written back to HBM once at the end.
        pl.BlockSpec((BS, D), lambda l: (0, 0)),
        pl.BlockSpec((1, B, S, S), lambda l: (l, 0, 0, 0)),
    ]
    out_shape = [
        jax.ShapeDtypeStruct((BS, D), jnp.float32),
        jax.ShapeDtypeStruct((L, B, S, S), jnp.float32),
    ]

    # Explicit VMEM budget: 2x (double-buffering) every block, plus headroom,
    # clamped well inside v7x's 64 MiB physical VMEM.
    blocks = ([((BS, D), jnp.float32), ((B, 1, S), jnp.float32)]
              + [((1,) + p.shape[1:], p.dtype) for p in params]
              + [((BS, D), jnp.float32), ((1, B, S, S), jnp.float32)])
    resident_bytes = sum(_padded_block_bytes(s, d) for s, d in blocks)
    vmem_limit = int(min(2 * resident_bytes + (16 << 20), 48 << 20))

    kernel = functools.partial(encoder_stack_kernel, batch=B, seq=S, d_k=d_k,
                               compute_dtype=compute_dtype)
    out2d, attns = pl.pallas_call(
        kernel,
        grid=(L,),
        in_specs=in_specs,
        out_specs=out_specs,
        out_shape=out_shape,
        compiler_params=pltpu.CompilerParams(
            # Layer axis is a sequential dependency chain (resident activation),
            # so it must be "arbitrary".  At realistic batch sizes a leading
            # "parallel" batch-tile axis would be added for v7x's 2 TensorCores.
            dimension_semantics=("arbitrary",),
            vmem_limit_bytes=vmem_limit,
        ),
    )(x2d, pad3, *params)
    return out2d.reshape(B, S, D), attns


def make_pos_table(d_model, max_len):
    pe = np.array(
        [[pos / np.power(10000, 2 * i / d_model) for i in range(d_model)]
         if pos != 0 else np.zeros(d_model) for pos in range(max_len)]
    )
    pe[:, 0::2] = np.sin(pe[:, 0::2])
    pe[:, 1::2] = np.cos(pe[:, 1::2])
    return jnp.asarray(pe, dtype=jnp.float32)


def encoder_forward(token_ids, emb_table, pos_table, stacked_params, d_k,
                    compute_dtype=COMPUTE_DTYPE):
    # Word embedding gather + sinusoidal position add in plain JAX (XLA gather).
    B, S = token_ids.shape
    x = jnp.take(emb_table, token_ids, axis=0) + pos_table[None, :S, :]

    # Padding "mask": token == 0 marks padding along the key axis.  Only the
    # O(S) vector is built here; the kernel broadcasts it to [B, S, S].
    pad = (token_ids == 0).astype(jnp.float32)

    out, attns = encoder_stack(x, pad, stacked_params, d_k=d_k,
                               compute_dtype=compute_dtype)
    return out, [attns[l] for l in range(attns.shape[0])]


def init_stacked_params(key, n_layers, d_model, d_k, n_heads, d_ffn):
    hdk = n_heads * d_k
    assert hdk == d_model, "reference `context += q` requires n_heads*d_k == d_model"
    ks = jax.random.split(key, 12)
    s = 0.05

    def nrm(k, shape):
        return s * jax.random.normal(k, shape, jnp.float32)

    wq = nrm(ks[0], (n_layers, d_model, hdk)); bq = nrm(ks[1], (n_layers, 1, hdk))
    wk = nrm(ks[2], (n_layers, d_model, hdk)); bk = nrm(ks[3], (n_layers, 1, hdk))
    wv = nrm(ks[4], (n_layers, d_model, hdk)); bv = nrm(ks[5], (n_layers, 1, hdk))
    wo = nrm(ks[6], (n_layers, hdk, d_model)); bo = nrm(ks[7], (n_layers, 1, d_model))
    w1 = nrm(ks[8], (n_layers, d_model, d_ffn)); b1 = nrm(ks[9], (n_layers, 1, d_ffn))
    w2 = nrm(ks[10], (n_layers, d_ffn, d_model)); b2 = nrm(ks[11], (n_layers, 1, d_model))
    return [wq, bq, wk, bk, wv, bv, wo, bo, w1, b1, w2, b2]


def reference_forward(token_ids, emb_table, pos_table, stacked_params, d_k):
    """Pure-JAX reference (same math as the torch module's intent)."""
    B, S = token_ids.shape
    x = jnp.take(emb_table, token_ids, axis=0) + pos_table[None, :S, :]
    pad = (token_ids == 0)[:, None, :]
    wq, bq, wk, bk, wv, bv, wo, bo, w1, b1, w2, b2 = stacked_params
    attns = []
    for l in range(wq.shape[0]):
        q = x @ wq[l] + bq[l]
        k = x @ wk[l] + bk[l]
        v = x @ wv[l] + bv[l]
        scores = jnp.einsum('bqh,bkh->bqk', q, k) / jnp.sqrt(jnp.float32(d_k))
        scores = jnp.where(pad, jnp.float32(1e-9), scores)
        attn = jax.nn.softmax(scores, axis=-1)
        ctx = jnp.einsum('bqk,bkh->bqh', attn, v) + x
        h = _layernorm(ctx @ wo[l] + bo[l])
        hid = jnp.maximum(h @ w1[l] + b1[l], 0.0)
        x = _layernorm(hid @ w2[l] + b2[l] + h)
        attns.append(attn)
    return x, attns


if __name__ == "__main__":
    # Small, module-consistent shapes; feature dims chosen lane-dense
    # (d_model = n_heads*d_k = 128, d_ffn = 256) so every matmul / store uses
    # full 128-lane vregs without any padding logic.
    B, S = 2, 8
    d_model, vocab_size = 128, 50
    d_k, n_heads = 32, 4
    max_len, n_layers, d_ffn = 16, 2, 256

    root = jax.random.PRNGKey(0)
    k_emb, k_ids, k_par = jax.random.split(root, 3)

    emb_table = 0.1 * jax.random.normal(k_emb, (vocab_size, d_model), jnp.float32)
    pos_table = make_pos_table(d_model, max_len)
    params = init_stacked_params(k_par, n_layers, d_model, d_k, n_heads, d_ffn)

    token_ids = jax.random.randint(k_ids, (B, S), 0, vocab_size)
    token_ids = token_ids.at[:, -2:].set(0)     # ensure some padding tokens

    out, attns = encoder_forward(token_ids, emb_table, pos_table, params, d_k)
    jax.block_until_ready(out)
    jax.block_until_ready(attns)

    # Correctness against a pure-JAX reference (loose tol: MXU vs XLA matmul
    # accumulation order / precision may differ slightly).
    ref_out, ref_attns = reference_forward(token_ids, emb_table, pos_table, params, d_k)
    np.testing.assert_allclose(np.asarray(out), np.asarray(ref_out),
                               rtol=5e-2, atol=5e-2)
    for a, ra in zip(attns, ref_attns):
        np.testing.assert_allclose(np.asarray(a), np.asarray(ra),
                                   rtol=5e-2, atol=5e-2)

    assert out.shape == (B, S, d_model)
    assert len(attns) == n_layers and attns[0].shape == (B, S, S)
    assert bool(jnp.all(jnp.isfinite(out)))
    print("KERNEL_OK")
</pallas_src>

<mosaic_0001>
module attributes {stable_mosaic.version = 11 : i64} {
  func.func @encoder_stack_kernel(%arg0: i32, %arg1: memref<16x128xf32, #tpu.memory_space<vmem>>, %arg2: memref<2x1x8xf32, #tpu.memory_space<vmem>>, %arg3: memref<1x128x128xf32, #tpu.memory_space<vmem>>, %arg4: memref<1x1x128xf32, #tpu.memory_space<vmem>>, %arg5: memref<1x128x128xf32, #tpu.memory_space<vmem>>, %arg6: memref<1x1x128xf32, #tpu.memory_space<vmem>>, %arg7: memref<1x128x128xf32, #tpu.memory_space<vmem>>, %arg8: memref<1x1x128xf32, #tpu.memory_space<vmem>>, %arg9: memref<1x128x128xf32, #tpu.memory_space<vmem>>, %arg10: memref<1x1x128xf32, #tpu.memory_space<vmem>>, %arg11: memref<1x128x256xf32, #tpu.memory_space<vmem>>, %arg12: memref<1x1x256xf32, #tpu.memory_space<vmem>>, %arg13: memref<1x256x128xf32, #tpu.memory_space<vmem>>, %arg14: memref<1x1x128xf32, #tpu.memory_space<vmem>>, %arg15: memref<16x128xf32, #tpu.memory_space<vmem>>, %arg16: memref<1x2x8x8xf32, #tpu.memory_space<vmem>>) attributes {dimension_semantics = [#tpu.dimension_semantics<arbitrary>], iteration_bounds = array<i64: 2>, scalar_prefetch = 0 : i64, scratch_operands = 0 : i64, tpu.core_type = #tpu.core_type<tc>, window_params = [{pipeline_mode = #tpu.pipeline_mode<synchronous>, transform_indices = @transform_0, window_bounds = array<i64: 16, 128>}, {pipeline_mode = #tpu.pipeline_mode<synchronous>, transform_indices = @transform_1, window_bounds = array<i64: 2, 1, 8>}, {transform_indices = @transform_2, window_bounds = array<i64: 1, 128, 128>}, {transform_indices = @transform_3, window_bounds = array<i64: 1, 1, 128>}, {transform_indices = @transform_4, window_bounds = array<i64: 1, 128, 128>}, {transform_indices = @transform_5, window_bounds = array<i64: 1, 1, 128>}, {transform_indices = @transform_6, window_bounds = array<i64: 1, 128, 128>}, {transform_indices = @transform_7, window_bounds = array<i64: 1, 1, 128>}, {transform_indices = @transform_8, window_bounds = array<i64: 1, 128, 128>}, {transform_indices = @transform_9, window_bounds = array<i64: 1, 1, 128>}, {transform_indices = @transform_10, window_bounds = array<i64: 1, 128, 256>}, {transform_indices = @transform_11, window_bounds = array<i64: 1, 1, 256>}, {transform_indices = @transform_12, window_bounds = array<i64: 1, 256, 128>}, {transform_indices = @transform_13, window_bounds = array<i64: 1, 1, 128>}, {pipeline_mode = #tpu.pipeline_mode<synchronous>, transform_indices = @transform_14, window_bounds = array<i64: 16, 128>}, {transform_indices = @transform_15, window_bounds = array<i64: 1, 2, 8, 8>}]} {
    %c0_i32 = arith.constant 0 : i32
    %0 = arith.cmpi eq, %arg0, %c0_i32 : i32
    %1 = arith.extui %0 : i1 to i32
    %c0_i32_0 = arith.constant 0 : i32
    %2 = arith.cmpi ne, %1, %c0_i32_0 : i32
    scf.if %2 {
      %c0_70 = arith.constant 0 : index
      %c0_71 = arith.constant 0 : index
      %114 = vector.load %arg1[%c0_70, %c0_71] : memref<16x128xf32, #tpu.memory_space<vmem>>, vector<16x128xf32>
      %c0_72 = arith.constant 0 : index
      %c0_73 = arith.constant 0 : index
      %115 = vector.load %arg15[%c0_72, %c0_73] : memref<16x128xf32, #tpu.memory_space<vmem>>, vector<16x128xf32>
      tpu.vector_store %arg15[%c0_72, %c0_73], %114 {strides = array<i32>} : memref<16x128xf32, #tpu.memory_space<vmem>>, vector<16x128xf32>,
    } else {
    }
    %c0 = arith.constant 0 : index
    %c0_1 = arith.constant 0 : index
    %3 = vector.load %arg15[%c0, %c0_1] : memref<16x128xf32, #tpu.memory_space<vmem>>, vector<16x128xf32>
    %c0_2 = arith.constant 0 : index
    %c0_3 = arith.constant 0 : index
    %c0_4 = arith.constant 0 : index
    %4 = vector.load %arg2[%c0_2, %c0_3, %c0_4] : memref<2x1x8xf32, #tpu.memory_space<vmem>>, vector<2x1x8xf32>
    %c0_5 = arith.constant 0 : index
    %c0_6 = arith.constant 0 : index
    %c0_7 = arith.constant 0 : index
    %5 = vector.load %arg3[%c0_5, %c0_6, %c0_7] : memref<1x128x128xf32, #tpu.memory_space<vmem>>, vector<1x128x128xf32>
    %6 = vector.shape_cast %5 : vector<1x128x128xf32> to vector<128x128xf32>
    %cst = arith.constant dense<0.000000e+00> : vector<16x128xf32>
    %7 = tpu.matmul %3, %6, %cst {dimension_numbers = #tpu.dot_dimension_numbers<[1], [0], [0], [1], [0, 0, 1, 1], [], []>} : vector<16x128xf32>, vector<128x128xf32>, vector<16x128xf32> -> vector<16x128xf32>
    %c0_8 = arith.constant 0 : index
    %c0_9 = arith.constant 0 : index
    %c0_10 = arith.constant 0 : index
    %8 = vector.load %arg4[%c0_8, %c0_9, %c0_10] : memref<1x1x128xf32, #tpu.memory_space<vmem>>, vector<1x1x128xf32>
    %9 = vector.shape_cast %8 : vector<1x1x128xf32> to vector<1x128xf32>
    %10 = vector.broadcast %9 : vector<1x128xf32> to vector<16x128xf32>
    %11 = arith.addf %7, %10 : vector<16x128xf32>
    %c0_11 = arith.constant 0 : index
    %c0_12 = arith.constant 0 : index
    %c0_13 = arith.constant 0 : index
    %12 = vector.load %arg5[%c0_11, %c0_12, %c0_13] : memref<1x128x128xf32, #tpu.memory_space<vmem>>, vector<1x128x128xf32>
    %13 = vector.shape_cast %12 : vector<1x128x128xf32> to vector<128x128xf32>
    %cst_14 = arith.constant dense<0.000000e+00> : vector<16x128xf32>
    %14 = tpu.matmul %3, %13, %cst_14 {dimension_numbers = #tpu.dot_dimension_numbers<[1], [0], [0], [1], [0, 0, 1, 1], [], []>} : vector<16x128xf32>, vector<128x128xf32>, vector<16x128xf32> -> vector<16x128xf32>
    %c0_15 = arith.constant 0 : index
    %c0_16 = arith.constant 0 : index
    %c0_17 = arith.constant 0 : index
    %15 = vector.load %arg6[%c0_15, %c0_16, %c0_17] : memref<1x1x128xf32, #tpu.memory_space<vmem>>, vector<1x1x128xf32>
    %16 = vector.shape_cast %15 : vector<1x1x128xf32> to vector<1x128xf32>
    %17 = vector.broadcast %16 : vector<1x128xf32> to vector<16x128xf32>
    %18 = arith.addf %14, %17 : vector<16x128xf32>
    %c0_18 = arith.constant 0 : index
    %c0_19 = arith.constant 0 : index
    %c0_20 = arith.constant 0 : index
    %19 = vector.load %arg7[%c0_18, %c0_19, %c0_20] : memref<1x128x128xf32, #tpu.memory_space<vmem>>, vector<1x128x128xf32>
    %20 = vector.shape_cast %19 : vector<1x128x128xf32> to vector<128x128xf32>
    %cst_21 = arith.constant dense<0.000000e+00> : vector<16x128xf32>
    %21 = tpu.matmul %3, %20, %cst_21 {dimension_numbers = #tpu.dot_dimension_numbers<[1], [0], [0], [1], [0, 0, 1, 1], [], []>} : vector<16x128xf32>, vector<128x128xf32>, vector<16x128xf32> -> vector<16x128xf32>
    %c0_22 = arith.constant 0 : index
    %c0_23 = arith.constant 0 : index
    %c0_24 = arith.constant 0 : index
    %22 = vector.load %arg8[%c0_22, %c0_23, %c0_24] : memref<1x1x128xf32, #tpu.memory_space<vmem>>, vector<1x1x128xf32>
    %23 = vector.shape_cast %22 : vector<1x1x128xf32> to vector<1x128xf32>
    %24 = vector.broadcast %23 : vector<1x128xf32> to vector<16x128xf32>
    %25 = arith.addf %21, %24 : vector<16x128xf32>
    %26 = vector.shape_cast %11 : vector<16x128xf32> to vector<2x8x128xf32>
    %27 = vector.shape_cast %18 : vector<16x128xf32> to vector<2x8x128xf32>
    %28 = vector.shape_cast %25 : vector<16x128xf32> to vector<2x8x128xf32>
    "tpu.trace_start"() <{level = 10 : i32, message = "bqh,bkh->bqk"}> : () -> ()
    %cst_25 = arith.constant dense<0.000000e+00> : vector<2x8x8xf32>
    %29 = tpu.matmul %26, %27, %cst_25 {dimension_numbers = #tpu.dot_dimension_numbers<[2], [2], [1], [1], [0, 0, 0, 1, 1, 1], [0], [0]>} : vector<2x8x128xf32>, vector<2x8x128xf32>, vector<2x8x8xf32> -> vector<2x8x8xf32>
    "tpu.trace_stop"() : () -> ()
    %cst_26 = arith.constant 0.176776692 : f32
    %30 = vector.broadcast %cst_26 : f32 to vector<2x8x8xf32>
    %31 = arith.mulf %29, %30 : vector<2x8x8xf32>
    %cst_27 = arith.constant 5.000000e-01 : f32
    %32 = vector.broadcast %cst_27 : f32 to vector<2x1x8xf32>
    %33 = arith.cmpf ogt, %4, %32 : vector<2x1x8xf32>
    %cst_28 = arith.constant 9.99999971E-10 : f32
    %34 = vector.shape_cast %33 : vector<2x1x8xi1> to vector<2x1x8xi1>
    %35 = vector.broadcast %34 : vector<2x1x8xi1> to vector<2x8x8xi1>
    %36 = vector.broadcast %cst_28 : f32 to vector<2x8x8xf32>
    %37 = arith.select %35, %36, %31 : vector<2x8x8xi1>, vector<2x8x8xf32>
    %cst_29 = arith.constant dense<0xFF800000> : vector<2x8xf32>
    %38 = vector.multi_reduction <maximumf>, %37, %cst_29 [2] : vector<2x8x8xf32> to vector<2x8xf32>
    %39 = vector.shape_cast %38 : vector<2x8xf32> to vector<2x8x1xf32>
    %40 = vector.broadcast %39 : vector<2x8x1xf32> to vector<2x8x8xf32>
    %41 = arith.subf %37, %40 : vector<2x8x8xf32>
    %42 = math.exp %41 : vector<2x8x8xf32>
    %cst_30 = arith.constant dense<0.000000e+00> : vector<2x8xf32>
    %43 = vector.multi_reduction <add>, %42, %cst_30 [2] : vector<2x8x8xf32> to vector<2x8xf32>
    %44 = vector.shape_cast %43 : vector<2x8xf32> to vector<2x8x1xf32>
    %45 = vector.broadcast %44 : vector<2x8x1xf32> to vector<2x8x8xf32>
    %46 = arith.divf %42, %45 : vector<2x8x8xf32>
    "tpu.trace_start"() <{level = 10 : i32, message = "bqk,bkh->bqh"}> : () -> ()
    %cst_31 = arith.constant dense<0.000000e+00> : vector<2x8x128xf32>
    %47 = tpu.matmul %46, %28, %cst_31 {dimension_numbers = #tpu.dot_dimension_numbers<[2], [1], [1], [2], [0, 0, 0, 1, 1, 2], [0], [0]>} : vector<2x8x8xf32>, vector<2x8x128xf32>, vector<2x8x128xf32> -> vector<2x8x128xf32>
    "tpu.trace_stop"() : () -> ()
    %48 = vector.shape_cast %47 : vector<2x8x128xf32> to vector<16x128xf32>
    %49 = arith.addf %48, %3 : vector<16x128xf32>
    %c0_32 = arith.constant 0 : index
    %c0_33 = arith.constant 0 : index
    %c0_34 = arith.constant 0 : index
    %50 = vector.load %arg9[%c0_32, %c0_33, %c0_34] : memref<1x128x128xf32, #tpu.memory_space<vmem>>, vector<1x128x128xf32>
    %51 = vector.shape_cast %50 : vector<1x128x128xf32> to vector<128x128xf32>
    %cst_35 = arith.constant dense<0.000000e+00> : vector<16x128xf32>
    %52 = tpu.matmul %49, %51, %cst_35 {dimension_numbers = #tpu.dot_dimension_numbers<[1], [0], [0], [1], [0, 0, 1, 1], [], []>} : vector<16x128xf32>, vector<128x128xf32>, vector<16x128xf32> -> vector<16x128xf32>
    %c0_36 = arith.constant 0 : index
    %c0_37 = arith.constant 0 : index
    %c0_38 = arith.constant 0 : index
    %53 = vector.load %arg10[%c0_36, %c0_37, %c0_38] : memref<1x1x128xf32, #tpu.memory_space<vmem>>, vector<1x1x128xf32>
    %54 = vector.shape_cast %53 : vector<1x1x128xf32> to vector<1x128xf32>
    %55 = vector.broadcast %54 : vector<1x128xf32> to vector<16x128xf32>
    %56 = arith.addf %52, %55 : vector<16x128xf32>
    %cst_39 = arith.constant dense<0.000000e+00> : vector<16xf32>
    %57 = vector.multi_reduction <add>, %56, %cst_39 [1] : vector<16x128xf32> to vector<16xf32>
    %58 = vector.shape_cast %57 : vector<16xf32> to vector<16x1xf32>
    %cst_40 = arith.constant 1.280000e+02 : f32
    %59 = vector.broadcast %cst_40 : f32 to vector<16x1xf32>
    %60 = arith.divf %58, %59 : vector<16x1xf32>
    %61 = vector.broadcast %60 : vector<16x1xf32> to vector<16x128xf32>
    %62 = arith.subf %56, %61 : vector<16x128xf32>
    %63 = arith.mulf %62, %62 : vector<16x128xf32>
    %cst_41 = arith.constant dense<0.000000e+00> : vector<16xf32>
    %64 = vector.multi_reduction <add>, %63, %cst_41 [1] : vector<16x128xf32> to vector<16xf32>
    %65 = vector.shape_cast %64 : vector<16xf32> to vector<16x1xf32>
    %cst_42 = arith.constant 1.280000e+02 : f32
    %66 = vector.broadcast %cst_42 : f32 to vector<16x1xf32>
    %67 = arith.divf %65, %66 : vector<16x1xf32>
    %68 = vector.broadcast %60 : vector<16x1xf32> to vector<16x128xf32>
    %69 = arith.subf %56, %68 : vector<16x128xf32>
    %cst_43 = arith.constant 9.99999974E-6 : f32
    %70 = vector.broadcast %cst_43 : f32 to vector<16x1xf32>
    %71 = arith.addf %67, %70 : vector<16x1xf32>
    %72 = math.rsqrt %71 : vector<16x1xf32>
    %73 = vector.broadcast %72 : vector<16x1xf32> to vector<16x128xf32>
    %74 = arith.mulf %69, %73 : vector<16x128xf32>
    %c0_44 = arith.constant 0 : index
    %c0_45 = arith.constant 0 : index
    %c0_46 = arith.constant 0 : index
    %75 = vector.load %arg11[%c0_44, %c0_45, %c0_46] : memref<1x128x256xf32, #tpu.memory_space<vmem>>, vector<1x128x256xf32>
    %76 = vector.shape_cast %75 : vector<1x128x256xf32> to vector<128x256xf32>
    %cst_47 = arith.constant dense<0.000000e+00> : vector<16x256xf32>
    %77 = tpu.matmul %74, %76, %cst_47 {dimension_numbers = #tpu.dot_dimension_numbers<[1], [0], [0], [1], [0, 0, 1, 1], [], []>} : vector<16x128xf32>, vector<128x256xf32>, vector<16x256xf32> -> vector<16x256xf32>
    %c0_48 = arith.constant 0 : index
    %c0_49 = arith.constant 0 : index
    %c0_50 = arith.constant 0 : index
    %78 = vector.load %arg12[%c0_48, %c0_49, %c0_50] : memref<1x1x256xf32, #tpu.memory_space<vmem>>, vector<1x1x256xf32>
    %79 = vector.shape_cast %78 : vector<1x1x256xf32> to vector<1x256xf32>
    %80 = vector.broadcast %79 : vector<1x256xf32> to vector<16x256xf32>
    %81 = arith.addf %77, %80 : vector<16x256xf32>
    %cst_51 = arith.constant 0.000000e+00 : f32
    %82 = vector.broadcast %cst_51 : f32 to vector<16x256xf32>
    %83 = arith.maximumf %81, %82 : vector<16x256xf32>
    %c0_52 = arith.constant 0 : index
    %c0_53 = arith.constant 0 : index
    %c0_54 = arith.constant 0 : index
    %84 = vector.load %arg13[%c0_52, %c0_53, %c0_54] : memref<1x256x128xf32, #tpu.memory_space<vmem>>, vector<1x256x128xf32>
    %85 = vector.shape_cast %84 : vector<1x256x128xf32> to vector<256x128xf32>
    %cst_55 = arith.constant dense<0.000000e+00> : vector<16x128xf32>
    %86 = tpu.matmul %83, %85, %cst_55 {dimension_numbers = #tpu.dot_dimension_numbers<[1], [0], [0], [1], [0, 0, 1, 1], [], []>} : vector<16x256xf32>, vector<256x128xf32>, vector<16x128xf32> -> vector<16x128xf32>
    %c0_56 = arith.constant 0 : index
    %c0_57 = arith.constant 0 : index
    %c0_58 = arith.constant 0 : index
    %87 = vector.load %arg14[%c0_56, %c0_57, %c0_58] : memref<1x1x128xf32, #tpu.memory_space<vmem>>, vector<1x1x128xf32>
    %88 = vector.shape_cast %87 : vector<1x1x128xf32> to vector<1x128xf32>
    %89 = vector.broadcast %88 : vector<1x128xf32> to vector<16x128xf32>
    %90 = arith.addf %86, %89 : vector<16x128xf32>
    %91 = arith.addf %90, %74 : vector<16x128xf32>
    %cst_59 = arith.constant dense<0.000000e+00> : vector<16xf32>
    %92 = vector.multi_reduction <add>, %91, %cst_59 [1] : vector<16x128xf32> to vector<16xf32>
    %93 = vector.shape_cast %92 : vector<16xf32> to vector<16x1xf32>
    %cst_60 = arith.constant 1.280000e+02 : f32
    %94 = vector.broadcast %cst_60 : f32 to vector<16x1xf32>
    %95 = arith.divf %93, %94 : vector<16x1xf32>
    %96 = vector.broadcast %95 : vector<16x1xf32> to vector<16x128xf32>
    %97 = arith.subf %91, %96 : vector<16x128xf32>
    %98 = arith.mulf %97, %97 : vector<16x128xf32>
    %cst_61 = arith.constant dense<0.000000e+00> : vector<16xf32>
    %99 = vector.multi_reduction <add>, %98, %cst_61 [1] : vector<16x128xf32> to vector<16xf32>
    %100 = vector.shape_cast %99 : vector<16xf32> to vector<16x1xf32>
    %cst_62 = arith.constant 1.280000e+02 : f32
    %101 = vector.broadcast %cst_62 : f32 to vector<16x1xf32>
    %102 = arith.divf %100, %101 : vector<16x1xf32>
    %103 = vector.broadcast %95 : vector<16x1xf32> to vector<16x128xf32>
    %104 = arith.subf %91, %103 : vector<16x128xf32>
    %cst_63 = arith.constant 9.99999974E-6 : f32
    %105 = vector.broadcast %cst_63 : f32 to vector<16x1xf32>
    %106 = arith.addf %102, %105 : vector<16x1xf32>
    %107 = math.rsqrt %106 : vector<16x1xf32>
    %108 = vector.broadcast %107 : vector<16x1xf32> to vector<16x128xf32>
    %109 = arith.mulf %104, %108 : vector<16x128xf32>
    %c0_64 = arith.constant 0 : index
    %c0_65 = arith.constant 0 : index
    %110 = vector.load %arg15[%c0_64, %c0_65] : memref<16x128xf32, #tpu.memory_space<vmem>>, vector<16x128xf32>
    tpu.vector_store %arg15[%c0_64, %c0_65], %109 {strides = array<i32>} : memref<16x128xf32, #tpu.memory_space<vmem>>, vector<16x128xf32>,
    %c0_66 = arith.constant 0 : index
    %c0_67 = arith.constant 0 : index
    %c0_68 = arith.constant 0 : index
    %c0_69 = arith.constant 0 : index
    %111 = vector.load %arg16[%c0_66, %c0_67, %c0_68, %c0_69] : memref<1x2x8x8xf32, #tpu.memory_space<vmem>>, vector<1x2x8x8xf32>
    %112 = vector.shape_cast %111 : vector<1x2x8x8xf32> to vector<2x8x8xf32>
    %113 = vector.shape_cast %46 : vector<2x8x8xf32> to vector<1x2x8x8xf32>
    tpu.vector_store %arg16[%c0_66, %c0_67, %c0_68, %c0_69], %113 {strides = array<i32>} : memref<1x2x8x8xf32, #tpu.memory_space<vmem>>, vector<1x2x8x8xf32>,
    return
  }
  func.func @transform_0(%arg0: i32) -> (i32, i32) {
    %c0_i32 = arith.constant 0 : i32
    %c0_i32_0 = arith.constant 0 : i32
    %c0_i32_1 = arith.constant 0 : i32
    return %c0_i32, %c0_i32_0 : i32, i32
  }
  func.func @transform_1(%arg0: i32) -> (i32, i32, i32) {
    %c0_i32 = arith.constant 0 : i32
    %c0_i32_0 = arith.constant 0 : i32
    %c0_i32_1 = arith.constant 0 : i32
    %c0_i32_2 = arith.constant 0 : i32
    return %c0_i32, %c0_i32_0, %c0_i32_1 : i32, i32, i32
  }
  func.func @transform_2(%arg0: i32) -> (i32, i32, i32) {
    %c0_i32 = arith.constant 0 : i32
    %c0_i32_0 = arith.constant 0 : i32
    %c0_i32_1 = arith.constant 0 : i32
    return %arg0, %c0_i32, %c0_i32_0 : i32, i32, i32
  }
  func.func @transform_3(%arg0: i32) -> (i32, i32, i32) {
    %c0_i32 = arith.constant 0 : i32
    %c0_i32_0 = arith.constant 0 : i32
    %c0_i32_1 = arith.constant 0 : i32
    return %arg0, %c0_i32, %c0_i32_0 : i32, i32, i32
  }
  func.func @transform_4(%arg0: i32) -> (i32, i32, i32) {
    %c0_i32 = arith.constant 0 : i32
    %c0_i32_0 = arith.constant 0 : i32
    %c0_i32_1 = arith.constant 0 : i32
    return %arg0, %c0_i32, %c0_i32_0 : i32, i32, i32
  }
  func.func @transform_5(%arg0: i32) -> (i32, i32, i32) {
    %c0_i32 = arith.constant 0 : i32
    %c0_i32_0 = arith.constant 0 : i32
    %c0_i32_1 = arith.constant 0 : i32
    return %arg0, %c0_i32, %c0_i32_0 : i32, i32, i32
  }
  func.func @transform_6(%arg0: i32) -> (i32, i32, i32) {
    %c0_i32 = arith.constant 0 : i32
    %c0_i32_0 = arith.constant 0 : i32
    %c0_i32_1 = arith.constant 0 : i32
    return %arg0, %c0_i32, %c0_i32_0 : i32, i32, i32
  }
  func.func @transform_7(%arg0: i32) -> (i32, i32, i32) {
    %c0_i32 = arith.constant 0 : i32
    %c0_i32_0 = arith.constant 0 : i32
    %c0_i32_1 = arith.constant 0 : i32
    return %arg0, %c0_i32, %c0_i32_0 : i32, i32, i32
  }
  func.func @transform_8(%arg0: i32) -> (i32, i32, i32) {
    %c0_i32 = arith.constant 0 : i32
    %c0_i32_0 = arith.constant 0 : i32
    %c0_i32_1 = arith.constant 0 : i32
    return %arg0, %c0_i32, %c0_i32_0 : i32, i32, i32
  }
  func.func @transform_9(%arg0: i32) -> (i32, i32, i32) {
    %c0_i32 = arith.constant 0 : i32
    %c0_i32_0 = arith.constant 0 : i32
    %c0_i32_1 = arith.constant 0 : i32
    return %arg0, %c0_i32, %c0_i32_0 : i32, i32, i32
  }
  func.func @transform_10(%arg0: i32) -> (i32, i32, i32) {
    %c0_i32 = arith.constant 0 : i32
    %c0_i32_0 = arith.constant 0 : i32
    %c0_i32_1 = arith.constant 0 : i32
    return %arg0, %c0_i32, %c0_i32_0 : i32, i32, i32
  }
  func.func @transform_11(%arg0: i32) -> (i32, i32, i32) {
    %c0_i32 = arith.constant 0 : i32
    %c0_i32_0 = arith.constant 0 : i32
    %c0_i32_1 = arith.constant 0 : i32
    return %arg0, %c0_i32, %c0_i32_0 : i32, i32, i32
  }
  func.func @transform_12(%arg0: i32) -> (i32, i32, i32) {
    %c0_i32 = arith.constant 0 : i32
    %c0_i32_0 = arith.constant 0 : i32
    %c0_i32_1 = arith.constant 0 : i32
    return %arg0, %c0_i32, %c0_i32_0 : i32, i32, i32
  }
  func.func @transform_13(%arg0: i32) -> (i32, i32, i32) {
    %c0_i32 = arith.constant 0 : i32
    %c0_i32_0 = arith.constant 0 : i32
    %c0_i32_1 = arith.constant 0 : i32
    return %arg0, %c0_i32, %c0_i32_0 : i32, i32, i32
  }
  func.func @transform_14(%arg0: i32) -> (i32, i32) {
    %c0_i32 = arith.constant 0 : i32
    %c0_i32_0 = arith.constant 0 : i32
    %c0_i32_1 = arith.constant 0 : i32
    return %c0_i32, %c0_i32_0 : i32, i32
  }
  func.func @transform_15(%arg0: i32) -> (i32, i32, i32, i32) {
    %c0_i32 = arith.constant 0 : i32
    %c0_i32_0 = arith.constant 0 : i32
    %c0_i32_1 = arith.constant 0 : i32
    %c0_i32_2 = arith.constant 0 : i32
    return %arg0, %c0_i32, %c0_i32_0, %c0_i32_1 : i32, i32, i32, i32
  }
}

</mosaic_0001>

<bundles_post_ra>
// kernel: tpu_custom_call.1
= control target key start
LH: loop header
LB: loop body
LE: loop exit
PB: predicated region body
PF: predicated region fallthrough
CT: control target
= control target key end

     0   :  { %s3878_s0 = inlined_call_operand.hbm [shape: f32[16,128], index: 0, kind: input, shape index: {}]   ;;  %s3879_s1 = inlined_call_operand.vmem [shape: f32[2,1,8], index: 1, kind: input, shape index: {}]   ;;  %s3880_s2 = inlined_call_operand.hbm [shape: f32[2,128,128], index: 2, kind: input, shape index: {}]   ;;  %s3881_s3 = inlined_call_operand.vmem [shape: f32[2,1,128], index: 3, kind: input, shape index: {}]   ;;  %s3882_s4 = inlined_call_operand.hbm [shape: f32[2,128,128], index: 4, kind: input, shape index: {}]   ;;  %s3883_s5 = inlined_call_operand.vmem [shape: f32[2,1,128], index: 5, kind: input, shape index: {}]   ;;  %s3884_s6 = inlined_call_operand.hbm [shape: f32[2,128,128], index: 6, kind: input, shape index: {}]   ;;  %s3885_s7 = inlined_call_operand.vmem [shape: f32[2,1,128], index: 7, kind: input, shape index: {}]   ;;  %s3886_s8 = inlined_call_operand.hbm [shape: f32[2,128,128], index: 8, kind: input, shape index: {}]   ;;  %s3887_s9 = inlined_call_operand.vmem [shape: f32[2,1,128], index: 9, kind: input, shape index: {}]   ;;  %s3888_s10 = inlined_call_operand.hbm [shape: f32[2,128,256], index: 10, kind: input, shape index: {}]   ;;  %s3889_s11 = inlined_call_operand.vmem [shape: f32[2,1,256], index: 11, kind: input, shape index: {}]   ;;  %s3890_s12 = inlined_call_operand.hbm [shape: f32[2,256,128], index: 12, kind: input, shape index: {}]   ;;  %s3891_s13 = inlined_call_operand.vmem [shape: f32[2,1,128], index: 13, kind: input, shape index: {}]   ;;  %s3892_s14 = inlined_call_operand.hbm [shape: f32[16,128], index: 14, kind: output, shape index: {0}]   ;;  %s3893_s15 = inlined_call_operand.hbm [shape: f32[2,2,8,8], index: 15, kind: output, shape index: {1}]  }
   0x1   :  { %3926 = sst [smem:[#allocation32_spill]] %s3878_s0 }
   0x2   :  { %3927 = sst [smem:[#allocation33_spill]] %s3879_s1 }
   0x3   :  { %3928 = sst [smem:[#allocation34_spill]] %s3880_s2 }
   0x4   :  { %3929 = sst [smem:[#allocation35_spill]] %s3882_s4 }
   0x5   :  { %3930 = sst [smem:[#allocation36_spill]] %s3883_s5 }
   0x6   :  { %3931 = sst [smem:[#allocation37_spill]] %s3884_s6 }
   0x7   :  { %3932 = sst [smem:[#allocation38_spill]] %s3885_s7 }
   0x8   :  { %3933 = sst [smem:[#allocation39_spill]] %s3886_s8 }
   0x9   :  { %3934 = sst [smem:[#allocation40_spill]] %s3887_s9 }
   0xa   :  { %3935 = sst [smem:[#allocation41_spill]] %s3888_s10 }
   0xb   :  { %3936 = sst [smem:[#allocation42_spill]] %s3889_s11 }
   0xc   :  { %3937 = sst [smem:[#allocation43_spill]] %s3890_s12 }
   0xd   :  { %3938 = sst [smem:[#allocation44_spill]] %s3891_s13 }
   0xe   :  { %3939 = sst [smem:[#allocation45_spill]] %s3892_s14 }
   0xf   :  { %3940 = sst [smem:[#allocation46_spill]] %s3893_s15 }
  0x10   :  { %21 = vsyncpa [#allocation3], 0 }
  0x11   :  { %22 = vsyncpa [#allocation6], 0 }
  0x12   :  { %24 = vsyncpa [#allocation6 + $0x1], 0 }
  0x13   :  { %25 = vsyncpa [#allocation9], 0 }
  0x14   :  { %27 = vsyncpa [#allocation9 + $0x1], 0 }
  0x15   :  { %28 = vsyncpa [#allocation12], 0 }
  0x16   :  { %30 = vsyncpa [#allocation12 + $0x1], 0 }
  0x17   :  { %31 = vsyncpa [#allocation4], 0 }
  0x18   :  { %32 = vsyncpa [#allocation16], 0 }
  0x19   :  { %34 = vsyncpa [#allocation16 + $0x1], 0  ;;  %s3170_s18 = smov 0   ;;  %s3172_s19 = smov 0  }
  0x1a   :  { %s3174_s20 = smov 0   ;;  %s3176_s21 = smov 0  }
  0x1b LB: > { %3941 = sst [smem:[#allocation23_spill]] %s3058_s18  ;;  %s3191_s22 = sadd.s32 1, %s3070_s21   ;;  %s3070_s21 = sphi %s3176_s21, %s4006_s21   ;;  %s3066_s20 = sphi %s3174_s20, %s4009_s20   ;;  %s3062_s19 = sphi %s3172_s19, %s4008_s19   ;;  %s3058_s18 = sphi %s3170_s18, %s4007_s18  }
  0x1c   : > { %3942 = sst [smem:[#allocation24_spill]] %s3062_s19  ;;  %s89_s23 = sadd.s32 1, %s3066_s20 }
  0x1d   : > { %3943 = sst [smem:[#allocation25_spill]] %s3066_s20  ;;  %s86_s24 = ssub.s32 %s3070_s21, %s3191_s22 }
  0x1e   : > { %3944 = sst [smem:[#allocation26_spill]] %s3070_s21  ;;  %p3900_p0 = scmp.ne.s32.totalorder %s3066_s20, %s3062_s19 }
  0x1f   : > { %3945 = sst [smem:[#allocation27_spill]] %s3191_s22  ;;  %p87_p1 = scmp.eq.s32.totalorder %s86_s24, 0 }
  0x20   : > { %p97_p2 = scmp.eq.s32.totalorder %s3070_s21, 0  ;;  %p2690_p5 = scmp.lt.s32.totalorder %s3070_s21, 2 }
  0x21   : > { %s3200_s25 = scalar_select %p87_p1, %s3066_s20, %s89_s23  }
  0x22   : > { %p98_p3 = por %p97_p2, %p3900_p0  ;;  %s3208_s26 = sand.u32 1, %s3070_s21  }
  0x23   : > { %3946 = sst [smem:[#allocation28_spill]] %s3200_s25  ;;  %s3894_s27 = sand.u32 1, %s3066_s20  }
  0x24   : > { %s3213_s28 = sshll.u32 %s3894_s27, 7  ;;  %s3216_s29 = sshll.u32 %s3070_s21, 11 }
  0x25   : > { %s3947_s2 = sld [smem:[#allocation34_spill]]  ;;  %s479_s23 = scalar_lea.vmem [#allocation5], %s3213_s28 }
  0x26   : > { %s486_s24 = sshll.u32 %s479_s23, 4  ;;  %p3225_p6 = pnand %p2690_p5, %p98_p3  ;;  %s3229_s24 = int_to_ptr.vmem [resolvable:$true] %s486_s24 }
  0x28   : > { %s3948_s25 = scalar_select %p3225_p6, 1, 0 }
  0x29   : > { %p3236_p8 = pneg %p3225_p6 }
  0x2b   : > { %s3222_s17 = scalar_lea.hbm %s3947_s2, %s3216_s29  ;;  %s2759_s14 = scalar_lea.hbm %s3947_s2, 4096 }
  0x2c   : > { %s2754_s22 = scalar_lea.hbm %s3222_s17, 2048  ;;  %p2760_p11 = scmp.lt.u32.totalorder %s3222_s17, %s3947_s2 }
  0x2d   : > { %p2755_p7 = scmp.ne.s32.totalorder %s3222_s17, %s2754_s22  ;;  %p2761_p12 = scmp.lt.u32.totalorder %s2759_s14, %s2754_s22 }
  0x2e   : > { %s3949_s30 = scalar_select %p3236_p8, 1, 0 }
  0x2f   : > { %p2757_p9 = pnand %p3236_p8, %p2755_p7  ;;  %p2762_p13 = por %p2761_p12, %p2760_p11 }
  0x30   : > { %p2763_p1 = scmp.lt.u32.totalorder %s2754_s22, %s3222_s17 }
  0x31   : > { %p2758_p10 = pneg %p2757_p9 }
  0x32   : > { %p2764_p2 = por %p2763_p1, %p2762_p13 }
  0x34   : > { %p2765_p3 = pnand %p2764_p2, %p2758_p10 }
  0x36   : > { %2768 = shalt.err (!%p2765_p3)
}
  0x37   : > { %s2769_s27 = scalar_lea.vmem %s3229_s24, 2048  ;;  %s3072_s16 = smov [#allocation5]  }
  0x38   : > { %p2770_p5 = scmp.ne.s32.totalorder %s3229_s24, %s2769_s27  ;;  %s2774_s23 = sshll.u32 %s3072_s16, 4  ;;  %s2775_s23 = int_to_ptr.vmem [resolvable:$false] %s2774_s23 }
  0x39   : > { %s2776_s1 = scalar_lea.vmem %s2775_s23, 4096  ;;  %p2777_p4 = scmp.lt.s32.totalorder %s3229_s24, %s2775_s23 }
  0x3a   : > { %p2772_p7 = pnand %p2770_p5, %p3236_p8  ;;  %p2778_p0 = scmp.lt.s32.totalorder %s2776_s1, %s2769_s27 }
  0x3c   : > { %p2773_p9 = pneg %p2772_p7  ;;  %p2779_p11 = por %p2778_p0, %p2777_p4 }
  0x3e   : > { %p2780_p12 = pnand %p2779_p11, %p2773_p9 }
  0x40   : > { %2783 = shalt.err (!%p2780_p12)
}
  0x41   : > { %s3902_s14 = smov 128   ;;  %s3904_s15 = smov 8  }
  0x42   : > { %s3950_s22 = scalar_lea.sflag [#allocation6], %s3208_s26  ;;  %s3951_s6 = sld [smem:[#allocation37_spill]] }
  0x43   : > { %2669 = dma.hbm_to_vmem [thread:$0]  (!%p3225_p6), %s3222_s17, 2048, %s3229_s24, %s3950_s22, %s3902_s14, %s3902_s14, %s3904_s15  }
  0x44   : > { %s533_s1 = scalar_lea.vmem [#allocation8], %s3213_s28  ;;  %s3901_s11 = scalar_lea.sflag [#allocation9], %s3208_s26 }
  0x45   : > { %s540_s2 = sshll.u32 %s533_s1, 4  ;;  %s3271_s2 = int_to_ptr.vmem [resolvable:$true] %s540_s2 }
  0x48   : > { %s3268_s23 = scalar_lea.hbm %s3951_s6, %s3216_s29  ;;  %s2789_s22 = scalar_lea.hbm %s3951_s6, 4096 }
  0x49   : > { %s2784_s13 = scalar_lea.hbm %s3268_s23, 2048  ;;  %p2790_p13 = scmp.lt.u32.totalorder %s3268_s23, %s3951_s6 }
  0x4a   : > { %p2785_p0 = scmp.ne.s32.totalorder %s3268_s23, %s2784_s13  ;;  %p2791_p1 = scmp.lt.u32.totalorder %s2789_s22, %s2784_s13 }
  0x4b   : > { %p2793_p3 = scmp.lt.u32.totalorder %s2784_s13, %s3268_s23 }
  0x4c   : > { %p2787_p4 = pnand %p2785_p0, %p3236_p8  ;;  %p2792_p2 = por %p2791_p1, %p2790_p13 }
  0x4e   : > { %p2788_p10 = pneg %p2787_p4  ;;  %p2794_p5 = por %p2793_p3, %p2792_p2 }
  0x50   : > { %p2795_p7 = pnand %p2794_p5, %p2788_p10 }
  0x52   : > { %2798 = shalt.err (!%p2795_p7)
}
  0x53   : > { %s2799_s1 = scalar_lea.vmem %s3271_s2, 2048  ;;  %s3075_s17 = smov [#allocation8]  }
  0x54   : > { %p2800_p9 = scmp.ne.s32.totalorder %s3271_s2, %s2799_s1  ;;  %s2804_s24 = sshll.u32 %s3075_s17, 4  ;;  %s2805_s24 = int_to_ptr.vmem [resolvable:$false] %s2804_s24 }
  0x55   : > { %s2806_s27 = scalar_lea.vmem %s2805_s24, 4096  ;;  %p2807_p0 = scmp.lt.s32.totalorder %s3271_s2, %s2805_s24 }
  0x56   : > { %p2802_p11 = pnand %p2800_p9, %p3236_p8  ;;  %p2808_p4 = scmp.lt.s32.totalorder %s2806_s27, %s2799_s1 }
  0x58   : > { %p2803_p12 = pneg %p2802_p11  ;;  %p2809_p13 = por %p2808_p4, %p2807_p0 }
  0x5a   : > { %p2810_p1 = pnand %p2809_p13, %p2803_p12 }
  0x5c   : > { %2813 = shalt.err (!%p2810_p1)
}
  0x5d   : > { %2675 = dma.hbm_to_vmem [thread:$0]  (!%p3225_p6), %s3268_s23, 2048, %s3271_s2, %s3901_s11, %s3902_s14, %s3902_s14, %s3904_s15  }
  0x5e   : > { %s3952_s13 = sand.u32 1, %s3066_s20   ;;  %s2167_s16 = sshll.u32 %s3070_s21, 12 }
  0x5f   : > { %s3302_s22 = sshll.u32 %s3952_s13, 8  ;;  %s3953_s10 = sld [smem:[#allocation41_spill]] }
  0x60   : > { %s587_s27 = scalar_lea.vmem [#allocation11], %s3302_s22  ;;  %s3906_s2 = scalar_lea.sflag [#allocation12], %s3208_s26 }
  0x61   : > { %s594_s6 = sshll.u32 %s587_s27, 4  ;;  %s3313_s6 = int_to_ptr.vmem [resolvable:$true] %s594_s6 }
  0x65   : > { %s3310_s24 = scalar_lea.hbm %s3953_s10, %s2167_s16  ;;  %s2819_s1 = scalar_lea.hbm %s3953_s10, 8192 }
  0x66   : > { %s2814_s23 = scalar_lea.hbm %s3310_s24, 4096  ;;  %p2820_p5 = scmp.lt.u32.totalorder %s3310_s24, %s3953_s10 }
  0x67   : > { %p2815_p10 = scmp.ne.s32.totalorder %s3310_s24, %s2814_s23  ;;  %p2821_p7 = scmp.lt.u32.totalorder %s2819_s1, %s2814_s23 }
  0x68   : > { %p2823_p11 = scmp.lt.u32.totalorder %s2814_s23, %s3310_s24 }
  0x69   : > { %p2817_p2 = pnand %p2815_p10, %p3236_p8  ;;  %p2822_p9 = por %p2821_p7, %p2820_p5 }
  0x6b   : > { %p2818_p3 = pneg %p2817_p2  ;;  %p2824_p12 = por %p2823_p11, %p2822_p9 }
  0x6d   : > { %p2825_p0 = pnand %p2824_p12, %p2818_p3 }
  0x6f   : > { %2828 = shalt.err (!%p2825_p0)
}
  0x70   : > { %s2829_s27 = scalar_lea.vmem %s3313_s6, 4096  ;;  %s3076_s11 = smov [#allocation11]  }
  0x71   : > { %p2830_p4 = scmp.ne.s32.totalorder %s3313_s6, %s2829_s27  ;;  %s2834_s13 = sshll.u32 %s3076_s11, 4  ;;  %s2835_s13 = int_to_ptr.vmem [resolvable:$false] %s2834_s13 }
  0x72   : > { %s2836_s14 = scalar_lea.vmem %s2835_s13, 8192  ;;  %p2837_p10 = scmp.lt.s32.totalorder %s3313_s6, %s2835_s13 }
  0x73   : > { %p2832_p13 = pnand %p2830_p4, %p3236_p8  ;;  %p2838_p2 = scmp.lt.s32.totalorder %s2836_s14, %s2829_s27 }
  0x75   : > { %p2833_p1 = pneg %p2832_p13  ;;  %p2839_p5 = por %p2838_p2, %p2837_p10 }
  0x77   : > { %p2840_p7 = pnand %p2839_p5, %p2833_p1 }
  0x79   : > { %2843 = shalt.err (!%p2840_p7)
}
  0x7a   : > { %s3077_s23 = smov 256   ;;  %s3078_s1 = smov 16  }
  0x7b   : > { %2681 = dma.hbm_to_vmem [thread:$0]  (!%p3225_p6), %s3310_s24, 4096, %s3313_s6, %s3906_s2, %s3077_s23, %s3077_s23, %s3078_s1  }
  0x7c   : > { %s3954_s12 = sld [smem:[#allocation43_spill]]  ;;  %s615_s13 = scalar_lea.vmem [#allocation13], %s3302_s22 }
  0x7d   : > { %s622_s14 = sshll.u32 %s615_s13, 4  ;;  %s3350_s15 = sadd.s32 4294967295, %s3070_s21   ;;  %s3347_s14 = int_to_ptr.vmem [resolvable:$true] %s622_s14 }
  0x7e   : > { %s2116_s10 = sadd.s32 4294967294, %s3070_s21   ;;  %p102_p3 = scmp.ne.s32.totalorder %s3062_s19, %s3058_s18 }
  0x7f   : > { %p3914_p9 = scmp.eq.s32.totalorder %s3350_s15, 0  ;;  %p3913_p11 = scmp.eq.s32.totalorder %s3350_s15, 1 }
  0x80   : > { %p439_p12 = scmp.eq.s32.totalorder %s2116_s10, 1  ;;  %p2117_p4 = scmp.ge.s32.totalorder %s3070_s21, 1 }
  0x81   : > { %p3359_p0 = por %p3914_p9, %p102_p3  ;;  %p3956_p13 = scmp.ne.s32.totalorder %s3066_s20, %s3062_s19 }
  0x82   : > { %s3344_s11 = scalar_lea.hbm %s3954_s12, %s2167_s16  ;;  %p3373_p10 = por %p439_p12, %p102_p3 }
  0x83   : > { %s3955_s6 = scalar_select %p3359_p0, 1, 0 }
  0x84   : > { %p3369_p1 = por %p3913_p11, %p3956_p13  ;;  %p446_p2 = scmp.lt.s32.totalorder %s3070_s21, 3 }
  0x85   : > { %s3959_s16 = scalar_select %p3373_p10, 1, 0 }
  0x86   : > { %s3957_s22 = scalar_select %p3369_p1, 1, 0 }
  0x87   : > { %3960 = sst [smem:[#allocation30_spill]] %s3959_s16  ;;  %p3379_p7 = pnand %p2117_p4, %p446_p2 }
  0x88   : > { %3958 = sst [smem:[#allocation29_spill]] %s3957_s22  ;;  %s3079_s24 = smov [#allocation2]  }
  0x89   : > { %s3961_s10 = scalar_select %p3379_p7, 1, 0 }
  0x8a   : > { %s458_s23 = sshll.u32 %s3079_s24, 4  ;;  %s3962_s4 = sld [smem:[#allocation35_spill]]  ;;  %s3383_s23 = int_to_ptr.vmem [resolvable:$true] %s458_s23 }
  0x8b   : > { %p2662_p3 = pneg %p3379_p7  ;;  %s506_s13 = scalar_lea.vmem [#allocation7], %s3213_s28 }
  0x8c   : > { %s513_s2 = sshll.u32 %s506_s13, 4  ;;  %s3964_s8 = sld [smem:[#allocation39_spill]]  ;;  %s3394_s2 = int_to_ptr.vmem [resolvable:$true] %s513_s2 }
  0x8d   : > { %p3398_p12 = pnand %p2662_p3, %p3914_p9 }
  0x8f   : > { %s3963_s24 = scalar_select %p3398_p12, 1, 0 }
  0x90   : > { %s3389_s27 = scalar_lea.hbm %s3962_s4, %s3216_s29  ;;  %s2849_s13 = scalar_lea.hbm %s3962_s4, 4096 }
  0x91   : > { %s2844_s17 = scalar_lea.hbm %s3389_s27, 2048  ;;  %p2850_p3 = scmp.lt.u32.totalorder %s3389_s27, %s3962_s4 }
  0x92   : > { %s3406_s1 = scalar_lea.hbm %s3964_s8, %s3216_s29  ;;  %p2845_p4 = scmp.ne.s32.totalorder %s3389_s27, %s2844_s17 }
  0x93   : > { %p2851_p11 = scmp.lt.u32.totalorder %s2849_s13, %s2844_s17  ;;  %p2853_p9 = scmp.lt.u32.totalorder %s2844_s17, %s3389_s27 }
  0x94   : > { %p2847_p13 = pnand %p2845_p4, %p3236_p8 }
  0x95   : > { %p2852_p5 = por %p2851_p11, %p2850_p3 }
  0x96   : > { %p2848_p2 = pneg %p2847_p13 }
  0x97   : > { %p2854_p10 = por %p2853_p9, %p2852_p5 }
  0x99   : > { %p2855_p1 = pnand %p2854_p10, %p2848_p2 }
  0x9b   : > { %2858 = shalt.err (!%p2855_p1)
}
  0x9c   : > { %s2859_s20 = scalar_lea.vmem %s3394_s2, 2048  ;;  %s3080_s18 = smov [#allocation7]  }
  0x9d   : > { %p2860_p4 = scmp.ne.s32.totalorder %s3394_s2, %s2859_s20  ;;  %s2864_s21 = sshll.u32 %s3080_s18, 4  ;;  %s2865_s21 = int_to_ptr.vmem [resolvable:$false] %s2864_s21 }
  0x9e   : > { %s2866_s9 = scalar_lea.vmem %s2865_s21, 4096  ;;  %p2867_p7 = scmp.lt.s32.totalorder %s3394_s2, %s2865_s21 }
  0x9f   : > { %p2862_p13 = pnand %p2860_p4, %p3236_p8  ;;  %p2868_p12 = scmp.lt.s32.totalorder %s2866_s9, %s2859_s20 }
  0xa1   : > { %p2863_p0 = pneg %p2862_p13  ;;  %p2869_p11 = por %p2868_p12, %p2867_p7 }
  0xa3   : > { %p2870_p3 = pnand %p2869_p11, %p2863_p0 }
  0xa5   : > { %2873 = shalt.err (!%p2870_p3)
}
  0xa6   : > { %s3965_s29 = smov 8   ;;  %s3966_s22 = smov 128  }
  0xa7   : > { %s3967_s16 = scalar_lea.sflag [#allocation6], %s3208_s26  ;;  %s560_s17 = scalar_lea.vmem [#allocation10], %s3213_s28 }
  0xa8   : > { %2672 = dma.hbm_to_vmem [thread:$0]  (!%p3225_p6), %s3389_s27, 2048, %s3394_s2, %s3967_s16, %s3966_s22, %s3966_s22, %s3965_s29  }
  0xa9   : > { %s567_s13 = sshll.u32 %s560_s17, 4  ;;  %s3968_s0 = sld [smem:[#allocation32_spill]]  ;;  %s3459_s13 = int_to_ptr.vmem [resolvable:$true] %s567_s13 }
  0xaa   : > { %p3969_p0 = scmp.ne.s32.totalorder %s3963_s24, 0 }
  0xac   : > { %p2876_p1 = pneg %p3969_p0 }
  0xaf   : > { %s2874_s20 = scalar_lea.hbm %s3968_s0, 256 }
  0xb0   : > { %p2875_p9 = scmp.ne.s32.totalorder %s3968_s0, %s2874_s20  ;;  %p2881_p7 = scmp.lt.u32.totalorder %s2874_s20, %s3968_s0 }
  0xb2   : > { %p2877_p10 = pnand %p2876_p1, %p2875_p9 }
  0xb4   : > { %p2878_p5 = pneg %p2877_p10 }
  0xb6   : > { %p2883_p12 = pnand %p2881_p7, %p2878_p5 }
  0xb8   : > { %2886 = shalt.err (!%p2883_p12)
}
  0xb9   : > { %s2887_s28 = scalar_lea.vmem %s3383_s23, 256  ;;  %p2895_p11 = scmp.lt.s32.totalorder %s3383_s23, %s3383_s23 }
  0xba   : > { %p2888_p2 = scmp.ne.s32.totalorder %s3383_s23, %s2887_s28  ;;  %p2896_p3 = scmp.lt.s32.totalorder %s2887_s28, %s2887_s28 }
  0xbc   : > { %p2890_p4 = pnand %p2888_p2, %p2876_p1  ;;  %p2897_p6 = por %p2896_p3, %p2895_p11 }
  0xbe   : > { %p2891_p13 = pneg %p2890_p4 }
  0xc0   : > { %p2898_p8 = pnand %p2897_p6, %p2891_p13 }
  0xc2   : > { %2901 = shalt.err (!%p2898_p8)
}
  0xc3   : > { %2665 = dma.hbm_to_vmem [thread:$0]  (!%p3969_p0), %s3968_s0, 256, %s3383_s23, [#allocation3], %s3966_s22, %s3966_s22, %s3965_s29  }
  0xc4   : > { %s2902_s7 = scalar_lea.hbm %s3406_s1, 2048  ;;  %p3970_p8 = scmp.ne.s32.totalorder %s3949_s30, 0 }
  0xc5   : > { %p2903_p6 = scmp.ne.s32.totalorder %s3406_s1, %s2902_s7  ;;  %s2907_s24 = scalar_lea.hbm %s3964_s8, 4096 }
  0xc6   : > { %p2908_p10 = scmp.lt.u32.totalorder %s3406_s1, %s3964_s8  ;;  %p2909_p5 = scmp.lt.u32.totalorder %s2907_s24, %s2902_s7 }
  0xc7   : > { %p2905_p9 = pnand %p2903_p6, %p3970_p8  ;;  %p2911_p12 = scmp.lt.u32.totalorder %s2902_s7, %s3406_s1 }
  0xc8   : > { %p2910_p7 = por %p2909_p5, %p2908_p10 }
  0xc9   : > { %p2906_p1 = pneg %p2905_p9 }
  0xca   : > { %p2912_p2 = por %p2911_p12, %p2910_p7 }
  0xcc   : > { %p2913_p0 = pnand %p2912_p2, %p2906_p1 }
  0xce   : > { %2916 = shalt.err (!%p2913_p0)
}
  0xcf   : > { %s2917_s23 = scalar_lea.vmem %s3459_s13, 2048  ;;  %s3081_s18 = smov [#allocation10]  }
  0xd0   : > { %p2918_p4 = scmp.ne.s32.totalorder %s3459_s13, %s2917_s23  ;;  %s2922_s21 = sshll.u32 %s3081_s18, 4  ;;  %s2923_s21 = int_to_ptr.vmem [resolvable:$false] %s2922_s21 }
  0xd1   : > { %s2924_s20 = scalar_lea.vmem %s2923_s21, 4096  ;;  %p2925_p3 = scmp.lt.s32.totalorder %s3459_s13, %s2923_s21 }
  0xd2   : > { %p2920_p13 = pnand %p2918_p4, %p3970_p8  ;;  %p2926_p6 = scmp.lt.s32.totalorder %s2924_s20, %s2917_s23 }
  0xd4   : > { %p2921_p11 = pneg %p2920_p13  ;;  %p2927_p9 = por %p2926_p6, %p2925_p3 }
  0xd6   : > { %p2928_p10 = pnand %p2927_p9, %p2921_p11 }
  0xd8   : > { %2931 = shalt.err (!%p2928_p10)
}
  0xd9   : > { %p3971_p1 = scmp.ne.s32.totalorder %s3948_s25, 0  ;;  %s3972_s9 = scalar_lea.sflag [#allocation9], %s3208_s26 }
  0xda   : > { %s2932_s28 = scalar_lea.hbm %s3344_s11, 4096  ;;  %s2937_s7 = scalar_lea.hbm %s3954_s12, 8192 }
  0xdb   : > { %2678 = dma.hbm_to_vmem [thread:$0]  (!%p3971_p1), %s3406_s1, 2048, %s3459_s13, %s3972_s9, %s3966_s22, %s3966_s22, %s3965_s29  }
  0xdc   : > { %p2933_p5 = scmp.ne.s32.totalorder %s3344_s11, %s2932_s28  ;;  %p2938_p2 = scmp.lt.u32.totalorder %s3344_s11, %s3954_s12 }
  0xdd   : > { %p2939_p0 = scmp.lt.u32.totalorder %s2937_s7, %s2932_s28  ;;  %p2941_p13 = scmp.lt.u32.totalorder %s2932_s28, %s3344_s11 }
  0xde   : > { %p2935_p7 = pnand %p2933_p5, %p3970_p8 }
  0xdf   : > { %p2940_p4 = por %p2939_p0, %p2938_p2 }
  0xe0   : > { %p2936_p12 = pneg %p2935_p7 }
  0xe1   : > { %p2942_p11 = por %p2941_p13, %p2940_p4 }
  0xe3   : > { %p2943_p3 = pnand %p2942_p11, %p2936_p12 }
  0xe5   : > { %2946 = shalt.err (!%p2943_p3)
}
  0xe6   : > { %s2947_s1 = scalar_lea.vmem %s3347_s14, 4096  ;;  %s3082_s13 = smov [#allocation13]  }
  0xe7   : > { %p2948_p6 = scmp.ne.s32.totalorder %s3347_s14, %s2947_s1  ;;  %s2952_s24 = sshll.u32 %s3082_s13, 4  ;;  %s2953_s24 = int_to_ptr.vmem [resolvable:$false] %s2952_s24 }
  0xe8   : > { %s2954_s16 = scalar_lea.vmem %s2953_s24, 8192  ;;  %p2955_p5 = scmp.lt.s32.totalorder %s3347_s14, %s2953_s24 }
  0xe9   : > { %p2950_p9 = pnand %p2948_p6, %p3970_p8  ;;  %p2956_p7 = scmp.lt.s32.totalorder %s2954_s16, %s2947_s1 }
  0xeb   : > { %p2951_p10 = pneg %p2950_p9  ;;  %p2957_p2 = por %p2956_p7, %p2955_p5 }
  0xed   : > { %p2958_p0 = pnand %p2957_p2, %p2951_p10 }
  0xef   : > { %2961 = shalt.err (!%p2958_p0)
}
  0xf0   : > { %s3973_s17 = scalar_lea.sflag [#allocation12], %s3208_s26  ;;  %p3974_p8 = scmp.ne.s32.totalorder %s3961_s10, 0 }
  0xf1   : > { %2684 = dma.hbm_to_vmem [thread:$0]  (!%p3971_p1), %s3344_s11, 4096, %s3347_s14, %s3973_s17, %s3966_s22, %s3966_s22, %s3965_s29  }
  0xf2   : > { %640 = sbr.rel (%p3974_p8) target bundleno = 2573 (0xa0d), region = 76 }
  0xf9   : > { %p3975_p12 = scmp.eq.s32.totalorder %s3350_s15, 0 }
  0xfb   : > { %3033 = dma.done.wait (%p3975_p12), [#allocation3], 256   ;;  %p3976_p4 = pmov %p3975_p12 }
  0xfc   : > { %s646_s25 = sand.u32 1, %s3350_s15   ;;  %s3521_s30 = sand.u32 1, %s3062_s19  }
  0xfd   : > { %3035 = vsyncadd (%p3976_p4), [#allocation3], 4294967040  ;;  %3977 = sst [smem:[#allocation31_spill]] %s3521_s30  ;;  %s2140_s26 = sshll.u32 %s3521_s30, 7 }
  0xfe   : > { %s647_s23 = scalar_lea.sflag [#allocation6], %s646_s25  ;;  %s3524_s18 = scalar_lea.vmem [#allocation5], %s2140_s26 }
  0xff   : > { %p3978_p1 = scmp.ne.s32.totalorder %s3955_s6, 0 }
 0x101   : > { %3037 = dma.done.wait (%p3978_p1), %s647_s23, 4096  }
 0x102   : > { %3039 = vsyncadd (%p3978_p1), %s647_s23, 4294963200  ;;  %s3530_s11 = scalar_lea.vmem [#allocation7], %s2140_s26  ;;  %s665_s14 = scalar_lea.sflag [#allocation9], %s646_s25 }
 0x103   : > { %s3532_s10 = scalar_lea.vmem [#allocation8], %s2140_s26 }
 0x104   : > { %3041 = dma.done.wait (%p3978_p1), %s665_s14, 4096  }
 0x105   : > { %3043 = vsyncadd (%p3978_p1), %s665_s14, 4294963200  ;;  %s2144_s29 = sshll.u32 %s3521_s30, 8  ;;  %s3539_s22 = scalar_lea.vmem [#allocation10], %s2140_s26 }
 0x106   : > { %s683_s21 = scalar_lea.sflag [#allocation12], %s646_s25  ;;  %s3541_s20 = scalar_lea.vmem [#allocation11], %s2144_s29 }
 0x107   : > { %3045 = dma.done.wait (%p3978_p1), %s683_s21, 8192  }
 0x108   : > { %3047 = vsyncadd (%p3978_p1), %s683_s21, 4294959104  ;;  %s2146_s9 = sshll.u32 %s3521_s30, 4  ;;  %p786_p13 = scmp.lt.s32.totalorder %s3350_s15, 1 }
 0x109   : > { %s3979_s27 = sld [smem:[#allocation36_spill]]  ;;  %s3980_s16 = sld [smem:[#allocation38_spill]] }
 0x10a   : > { %s3550_s28 = scalar_select %p786_p13, %s3350_s15, 1 }
 0x10b   : > { %s3981_s23 = sld [smem:[#allocation40_spill]]  ;;  %s3982_s0 = sld [smem:[#allocation44_spill]] }
 0x10c   : > { %s2147_s21 = sshll.u32 %s3550_s28, 1  ;;  %s3983_s7 = sld [smem:[#allocation42_spill]] }
 0x10d   : > { %s3578_s2 = scalar_lea.vmem [#allocation13], %s2144_s29  ;;  %s3580_s6 = scalar_lea.vmem [#allocation15], %s2146_s9 }
 0x10e   : > { %p3984_p11 = scmp.ne.s32.totalorder %s3350_s15, 0 }
 0x10f   : > { %s791_s1 = scalar_lea.vmem %s3979_s27, %s3550_s28  ;;  %s794_s17 = scalar_lea.vmem %s3980_s16, %s3550_s28  ;;  %v809_v0 = vld [vmem:[#allocation2] sm:$0xff] (!%p3984_p11)  ;;  %v810_v1 = vld [vmem:[#allocation2 + $0x8] sm:$0xff] (!%p3984_p11) }
 0x110   : > { %808 = sbr.rel (%p3984_p11) target bundleno = 279 (0x117), region = 108  ;;  %811 = vst [vmem:[#allocation14] sm:$0xff] (!%p3984_p11), %v809_v0  ;;  %812 = vst [vmem:[#allocation14 + $0x8] sm:$0xff] (!%p3984_p11), %v810_v1 }
 0x111   : > { %s797_s14 = scalar_lea.vmem %s3981_s23, %s3550_s28  ;;  %s804_s8 = scalar_lea.vmem %s3982_s0, %s3550_s28 }
 0x112   : > { %s3576_s30 = scalar_lea.vmem %s3983_s7, %s2147_s21 }
 0x117 PF: > { %v915_v2 = vld [vmem:[%s3530_s11] sm:$0xff]  ;;  %v916_v3 = vld [vmem:[%s3530_s11 + $0x8] sm:$0xff]  ;;  %v917_v7 = vld [vmem:[%s3530_s11 + $0x10] sm:$0xff]  ;;  %vm3084_vm0 = vmmov 0   ;;  %s3988_s13 = sld [smem:[#allocation33_spill]]  ;;  %vm1269_vm4 = vcmask 64512  }
 0x118   : > { %v817_v4 = vld [vmem:[%s3524_s18] sm:$0xff]  ;;  %v2480_v5 = vpack.c.bf16 %v916_v3, %v915_v2  ;;  %v818_v6 = vld [vmem:[%s3524_s18 + $0x8] sm:$0xff]  ;;  %v918_v8 = vld [vmem:[%s3530_s11 + $0x18] sm:$0xff]  ;;  %s3991_s23 = sld [smem:[#allocation31_spill]]  ;;  %s3993_s4 = sld [smem:[#allocation46_spill]] }
 0x119   : > { %v2448_v9 = vpack.c.bf16 %v818_v6, %v817_v4  ;;  %v2484_v10 = vpack.c.bf16 %v918_v8, %v917_v7  ;;  %v819_v11 = vld [vmem:[%s3524_s18 + $0x10] sm:$0xff]  ;;  %v820_v12 = vld [vmem:[%s3524_s18 + $0x18] sm:$0xff]  ;;  %v919_v13 = vld [vmem:[%s3530_s11 + $0x20] sm:$0xff]  ;;  %s3086_s19 = smov [#allocation15]  }
 0x11a   : > { %2481 = vmatprep.subr.bf16.mxu1 %v2480_v5  ;;  %v2452_v14 = vpack.c.bf16 %v820_v12, %v819_v11  ;;  %v920_v15 = vld [vmem:[%s3530_s11 + $0x28] sm:$0xff]  ;;  %v821_v16 = vld [vmem:[%s3524_s18 + $0x20] sm:$0xff]  ;;  %v921_v20 = vld [vmem:[%s3530_s11 + $0x30] sm:$0xff]  ;;  %v3083_v12 = vmov 0.0  }
 0x11b   : > { %v822_v17 = vld [vmem:[%s3524_s18 + $0x28] sm:$0xff]  ;;  %2483 = vmatpush3.bf16.msra.mxu1 %v2480_v5  ;;  %2449 = vmatprep.subr.bf16.mxu0 %v2448_v9  ;;  %v2488_v18 = vpack.c.bf16 %v920_v15, %v919_v13  ;;  %v922_v21 = vld [vmem:[%s3530_s11 + $0x38] sm:$0xff]  ;;  %v823_v22 = vld [vmem:[%s3524_s18 + $0x30] sm:$0xff] }
 0x11c   : > { %2451 = vmatpush3.bf16.msra.mxu0 %v2448_v9  ;;  %2485 = vmatprep.subr.bf16.mxu1 %v2484_v10  ;;  %v2456_v19 = vpack.c.bf16 %v822_v17, %v821_v16  ;;  %v824_v23 = vld [vmem:[%s3524_s18 + $0x38] sm:$0xff]  ;;  %v2492_v24 = vpack.c.bf16 %v922_v21, %v921_v20  ;;  %v923_v26 = vld [vmem:[%s3530_s11 + $0x40] sm:$0xff]  ;;  %v924_v27 = vld [vmem:[%s3530_s11 + $0x48] sm:$0xff] }
 0x11d   : > { %2453 = vmatprep.subr.bf16.mxu0 %v2452_v14  ;;  %v2460_v25 = vpack.c.bf16 %v824_v23, %v823_v22  ;;  %v3602_v28 = vld [vmem:[#allocation14] sm:$0xff]  ;;  %v826_v30 = vld [vmem:[%s3524_s18 + $0x48] sm:$0xff]  ;;  %v2496_v31 = vpack.c.bf16 %v924_v27, %v923_v26  ;;  %v925_v33 = vld [vmem:[%s3530_s11 + $0x50] sm:$0xff] }
 0x11e   : > { %v825_v29 = vld [vmem:[%s3524_s18 + $0x40] sm:$0xff]  ;;  %2355 = vmatprep.mubr.f32.mxu1 %v3602_v28  ;;  %2320 = vmatprep.mubr.f32.mxu0 %v3602_v28  ;;  %v926_v34 = vld [vmem:[%s3530_s11 + $0x58] sm:$0xff]  ;;  %v827_v35 = vld [vmem:[%s3524_s18 + $0x50] sm:$0xff]  ;;  %s1829_s0 = scalar_lea.sflag [#allocation16], %s3991_s23 }
 0x11f   : > { %2487 = vmatpush3.bf16.msra.mxu1 %v2484_v10  ;;  %v2464_v32 = vpack.c.bf16 %v826_v30, %v825_v29  ;;  %v828_v36 = vld [vmem:[%s3524_s18 + $0x58] sm:$0xff]  ;;  %v2500_v37 = vpack.c.bf16 %v926_v34, %v925_v33  ;;  %v927_v39 = vld [vmem:[%s3530_s11 + $0x60] sm:$0xff]  ;;  %v928_v40 = vld [vmem:[%s3530_s11 + $0x68] sm:$0xff]  ;;  %v1257_v29 = vlaneseq  ;;  %v3085_v34 = vmov 0  }
 0x120   : > { %2455 = vmatpush3.bf16.msra.mxu0 %v2452_v14  ;;  %2489 = vmatprep.subr.bf16.mxu1 %v2488_v18  ;;  %v2468_v38 = vpack.c.bf16 %v828_v36, %v827_v35  ;;  %v829_v41 = vld [vmem:[%s3524_s18 + $0x60] sm:$0xff]  ;;  %v830_v42 = vld [vmem:[%s3524_s18 + $0x68] sm:$0xff]  ;;  %v2504_v43 = vpack.c.bf16 %v928_v40, %v927_v39  ;;  %v929_v45 = vld [vmem:[%s3530_s11 + $0x70] sm:$0xff] }
 0x121   : > { %2457 = vmatprep.subr.bf16.mxu0 %v2456_v19  ;;  %v2472_v44 = vpack.c.bf16 %v830_v42, %v829_v41  ;;  %v930_v46 = vld [vmem:[%s3530_s11 + $0x78] sm:$0xff]  ;;  %v831_v47 = vld [vmem:[%s3524_s18 + $0x70] sm:$0xff]  ;;  %v1013_v51 = vld [vmem:[%s3532_s10] sm:$0xff] }
 0x122   : > { %v832_v48 = vld [vmem:[%s3524_s18 + $0x78] sm:$0xff]  ;;  %v2508_v49 = vpack.c.bf16 %v930_v46, %v929_v45  ;;  %v1014_v52 = vld [vmem:[%s3532_s10 + $0x8] sm:$0xff]  ;;  %v1015_v54 = vld [vmem:[%s3532_s10 + $0x10] sm:$0xff]  ;;  %s2966_s18 = sshll.u32 %s3086_s19, 4  ;;  %s2967_s18 = int_to_ptr.vmem [resolvable:$false] %s2966_s18 }
 0x123   : > { %2491 = vmatpush3.bf16.msra.mxu1 %v2488_v18  ;;  %v2476_v50 = vpack.c.bf16 %v832_v48, %v831_v47  ;;  %v2512_v53 = vpack.c.bf16 %v1014_v52, %v1013_v51  ;;  %v1016_v55 = vld [vmem:[%s3532_s10 + $0x18] sm:$0xff]  ;;  %v3624_v56 = vld [vmem:[#allocation14 + $0x8] sm:$0xff]  ;;  %v1017_v58 = vld [vmem:[%s3532_s10 + $0x20] sm:$0xff]  ;;  %s2968_s11 = scalar_lea.vmem %s2967_s18, 512 }
 0x124   : > { %2459 = vmatpush3.bf16.msra.mxu0 %v2456_v19  ;;  %2493 = vmatprep.subr.bf16.mxu1 %v2492_v24  ;;  %v2516_v57 = vpack.c.bf16 %v1016_v55, %v1015_v54  ;;  %v1018_v59 = vld [vmem:[%s3532_s10 + $0x28] sm:$0xff]  ;;  %v1019_v61 = vld [vmem:[%s3532_s10 + $0x30] sm:$0xff]  ;;  %v1020_v62 = vld [vmem:[%s3532_s10 + $0x38] sm:$0xff] }
 0x125   : > { %2461 = vmatprep.subr.bf16.mxu0 %v2460_v25  ;;  %v2520_v60 = vpack.c.bf16 %v1018_v59, %v1017_v58  ;;  %v2524_v63 = vpack.c.bf16 %v1020_v62, %v1019_v61  ;;  %v1021_v0 = vld [vmem:[%s3532_s10 + $0x40] sm:$0xff]  ;;  %v1022_v1 = vld [vmem:[%s3532_s10 + $0x48] sm:$0xff]  ;;  %v1023_v3 = vld [vmem:[%s3532_s10 + $0x50] sm:$0xff] }
 0x126   : > { %v2528_v2 = vpack.c.bf16 %v1022_v1, %v1021_v0  ;;  %v1024_v4 = vld [vmem:[%s3532_s10 + $0x58] sm:$0xff]  ;;  %v1025_v6 = vld [vmem:[%s3532_s10 + $0x60] sm:$0xff]  ;;  %v1026_v7 = vld [vmem:[%s3532_s10 + $0x68] sm:$0xff] }
 0x127   : > { %2495 = vmatpush3.bf16.msra.mxu1 %v2492_v24  ;;  %v2532_v5 = vpack.c.bf16 %v1024_v4, %v1023_v3  ;;  %v2536_v8 = vpack.c.bf16 %v1026_v7, %v1025_v6  ;;  %v1027_v9 = vld [vmem:[%s3532_s10 + $0x70] sm:$0xff]  ;;  %v1028_v10 = vld [vmem:[%s3532_s10 + $0x78] sm:$0xff]  ;;  %s3986_s10 = scalar_lea.vmem %s3881_s3, %s3550_s28  ;;  %v1440_v62 = vld [vmem:[%s3539_s22] sm:$0xff] }
 0x128   : > { %2463 = vmatpush3.bf16.msra.mxu0 %v2460_v25  ;;  %2497 = vmatprep.subr.bf16.mxu1 %v2496_v31  ;;  %v2540_v11 = vpack.c.bf16 %v1028_v10, %v1027_v9  ;;  %v2150_v13 = vld [vmem:[%s791_s1] ss:$0 sm:$0xff]  ;;  %v1443_v4 = vld [vmem:[%s3539_s22 + $0x18] sm:$0xff]  ;;  %v1445_v9 = vld [vmem:[%s3539_s22 + $0x28] sm:$0xff] }
 0x129   : > { %2465 = vmatprep.subr.bf16.mxu0 %v2464_v32  ;;  %v2149_v15 = vld [vmem:[%s3986_s10] ss:$0 sm:$0xff] }
 0x12a   : > { %v2151_v23 = vld [vmem:[%s794_s17] ss:$0 sm:$0xff] }
 0x12b   : > { %2499 = vmatpush3.bf16.msra.mxu1 %v2496_v31  ;;  %v815_v30 = vld [vmem:[%s3988_s13] sm:$0x1]  ;;  %v3671_v31 = vshrl.u32 %v1257_v29, 7 }
 0x12c   : > { %2467 = vmatpush3.bf16.msra.mxu0 %v2464_v32  ;;  %2501 = vmatprep.subr.bf16.mxu1 %v2500_v37  ;;  %vm1253_vm1 = vcmp.gt.f32.partialorder %v815_v30, 0.5  ;;  %v816_v32 = vld [vmem:[%s3988_s13 + $0x1] sm:$0x1] }
 0x12d   : > { %2469 = vmatprep.subr.bf16.mxu0 %v2468_v38  ;;  %v3677_v33 = vsub.s32 0, %v3671_v31  ;;  %v1255_v35 = vsel %vm1253_vm1, 1, %v3085_v34  ;;  %vm1254_vm2 = vcmp.gt.f32.partialorder %v816_v32, 0.5  ;;  %v1442_v3 = vld [vmem:[%s3539_s22 + $0x10] sm:$0xff] }
 0x12e   : > { %v2548_v7 = vpack.c.bf16 %v1443_v4, %v1442_v3 }
 0x12f   : > { %2503 = vmatpush3.bf16.msra.mxu1 %v2500_v37  ;;  %v1260_v36 = vrot.slane %v1255_v35, %v3677_v33  ;;  %v1256_v37 = vsel %vm1254_vm2, 1, %v3085_v34 }
 0x130   : > { %2471 = vmatpush3.bf16.msra.mxu0 %v2468_v38  ;;  %2505 = vmatprep.subr.bf16.mxu1 %v2504_v43  ;;  %v1264_v39 = vrot.slane %v1256_v37, %v3677_v33 }
 0x131   : > { %2473 = vmatprep.subr.bf16.mxu0 %v2472_v44  ;;  %vm1265_vm3 = vcmp.eq.s32.totalorder %v1260_v36, 1  ;;  %v2154_v36 = vld [vmem:[%s797_s14] ss:$0 sm:$0xff]  ;;  %s3992_s14 = sld [smem:[#allocation29_spill]] }
 0x132   : > { %vm1266_vm5 = vcmp.eq.s32.totalorder %v1264_v39, 1 }
 0x133   : > { %2507 = vmatpush3.bf16.msra.mxu1 %v2504_v43 }
 0x134   : > { %2475 = vmatpush3.bf16.msra.mxu0 %v2472_v44  ;;  %2509 = vmatprep.subr.bf16.mxu1 %v2508_v49 }
 0x135   : > { %2477 = vmatprep.subr.bf16.mxu0 %v2476_v50 }
 0x137   : > { %2511 = vmatpush3.bf16.msra.mxu1 %v2508_v49  ;;  %p3994_p6 = scmp.ne.s32.totalorder %s3992_s14, 0 }
 0x138   : > { %2479 = vmatpush3.bf16.msra.mxu0 %v2476_v50  ;;  %2403 = vmatprep.subr.mxu1 %v3083_v12 }
 0x139   : > { %2513 = vmatprep.subr.bf16.mxu0 %v2512_v53 }
 0x13a   : > { %2356 = vmatmul.mubr.f32.vlgmr.msra.gmra.mrb[0].mxu1 %v3624_v56 }
 0x13b   : > { %2321 = vmatmul.mubr.f32.vlgmr.msra.gmra.mrb[0].mxu0 %v3624_v56  ;;  %2405 = vmatprep.mubr.msk.f32.mxu1 %vm3084_vm0, %v3083_v12 }
 0x13c   : > { %2515 = vmatpush3.bf16.msra.mxu0 %v2512_v53  ;;  %2390 = vmatprep.mubr.f32.mxu0 %v3602_v28 }
 0x13d   : > { %2517 = vmatprep.subr.bf16.mxu0 %v2516_v57 }
 0x140   : > { %2519 = vmatpush3.bf16.msra.mxu0 %v2516_v57 }
 0x141   : > { %2521 = vmatprep.subr.bf16.mxu0 %v2520_v60 }
 0x144   : > { %2523 = vmatpush3.bf16.msra.mxu0 %v2520_v60 }
 0x145   : > { %2525 = vmatprep.subr.bf16.mxu0 %v2524_v63 }
 0x148   : > { %2527 = vmatpush3.bf16.msra.mxu0 %v2524_v63  ;;  %v1441_v63 = vld [vmem:[%s3539_s22 + $0x8] sm:$0xff] }
 0x149   : > { %2529 = vmatprep.subr.bf16.mxu0 %v2528_v2 }
 0x14c   : > { %2531 = vmatpush3.bf16.msra.mxu0 %v2528_v2  ;;  %v2544_v2 = vpack.c.bf16 %v1441_v63, %v1440_v62  ;;  %v1575_v62 = vld [vmem:[%s3541_s20 + $0x70] sm:$0xff] }
 0x14d   : > { %2533 = vmatprep.subr.bf16.mxu0 %v2532_v5 }
 0x150   : > { %2535 = vmatpush3.bf16.msra.mxu0 %v2532_v5 }
 0x151   : > { %2537 = vmatprep.subr.bf16.mxu0 %v2536_v8 }
 0x154   : > { %2539 = vmatpush3.bf16.msra.mxu0 %v2536_v8  ;;  %v1444_v8 = vld [vmem:[%s3539_s22 + $0x20] sm:$0xff] }
 0x155   : > { %2541 = vmatprep.subr.bf16.mxu0 %v2540_v11  ;;  %v2552_v10 = vpack.c.bf16 %v1445_v9, %v1444_v8  ;;  %v1578_v8 = vld [vmem:[%s3541_s20 + $0x88] sm:$0xff]  ;;  %v1580_v9 = vld [vmem:[%s3541_s20 + $0x98] sm:$0xff] }
 0x158   : > { %2543 = vmatpush3.bf16.msra.mxu0 %v2540_v11  ;;  %v1446_v11 = vld [vmem:[%s3539_s22 + $0x30] sm:$0xff] }
 0x159   : > { %2393 = vmatprep.subr.mxu0 %v3083_v12 }
 0x15b   : > { %2391 = vmatmul.mubr.f32.vlgmr.msra.gmra.mrb[2].mxu0 %v3624_v56 }
 0x15c   : > { %2395 = vmatprep.mubr.msk.f32.mxu0 %vm3084_vm0, %v3083_v12 }
 0x20d   : > { %v2357_v14 = vpop.f32.mrb[0].mxu1 }
 0x20e   : > { %v1004_v16 = vpop.f32.mrb[1].mxu1  ;;  %v2322_v17 = vpop.f32.mrb[0].mxu0  ;;  %v1010_v21 = vadd.f32 %v2357_v14, %v2150_v13 }
 0x20f   : > { %v1005_v18 = vadd.f32 %v2150_v13, %v1004_v16  ;;  %v906_v19 = vpop.f32.mrb[1].mxu0  ;;  %v912_v22 = vadd.f32 %v2322_v17, %v2149_v15  ;;  %v1447_v13 = vld [vmem:[%s3539_s22 + $0x38] sm:$0xff]  ;;  %v1449_v16 = vld [vmem:[%s3539_s22 + $0x48] sm:$0xff] }
 0x210   : > { %v907_v20 = vadd.f32 %v2149_v15, %v906_v19  ;;  %v2556_v14 = vpack.c.bf16 %v1447_v13, %v1446_v11  ;;  %v1448_v15 = vld [vmem:[%s3539_s22 + $0x40] sm:$0xff]  ;;  %v1451_v19 = vld [vmem:[%s3539_s22 + $0x58] sm:$0xff]  ;;  %v1579_v13 = vld [vmem:[%s3541_s20 + $0x90] sm:$0xff] }
 0x211   : > { %2394 = vmatpush3.xpose.msra.mxu0 %v1005_v18  ;;  %v2560_v17 = vpack.c.bf16 %v1449_v16, %v1448_v15  ;;  %v1450_v18 = vld [vmem:[%s3539_s22 + $0x50] sm:$0xff]  ;;  %v1577_v11 = vld [vmem:[%s3541_s20 + $0x80] sm:$0xff]  ;;  %v1582_v15 = vld [vmem:[%s3541_s20 + $0xa8] sm:$0xff] }
 0x212   : > { %2398 = vmatprep.subr.mxu0 %v3083_v12  ;;  %v1584_v16 = vld [vmem:[%s3541_s20 + $0xb8] sm:$0xff] }
 0x214   : > { %2396 = vmatmul.mubr.f32.vlgmr.msra.gmra.mrb[4].mxu0 %v907_v20  ;;  %v2564_v20 = vpack.c.bf16 %v1451_v19, %v1450_v18  ;;  %v1581_v18 = vld [vmem:[%s3541_s20 + $0xa0] sm:$0xff]  ;;  %v1583_v19 = vld [vmem:[%s3541_s20 + $0xb0] sm:$0xff] }
 0x215   : > { %2399 = vmatpush3.xpose.msra.mxu0 %v1010_v21  ;;  %2400 = vmatprep.mubr.msk.f32.mxu0 %vm3084_vm0, %v3083_v12  ;;  %v1452_v21 = vld [vmem:[%s3539_s22 + $0x60] sm:$0xff] }
 0x218   : > { %2401 = vmatmul.mubr.f32.vlgmr.msra.gmra.mrb[6].mxu0 %v912_v22  ;;  %v1453_v22 = vld [vmem:[%s3539_s22 + $0x68] sm:$0xff] }
 0x219   : > { %1669 = vmatprep.mubr.f32.mxu0 %v3083_v12 }
 0x22e   : > { %v2392_v24 = vpop.f32.mrb[2].mxu0 }
 0x22f   : > { %v1108_v25 = vadd.f32 %v2392_v24, %v2151_v23  ;;  %v1102_v26 = vpop.f32.mrb[3].mxu0  ;;  %v1454_v24 = vld [vmem:[%s3539_s22 + $0x70] sm:$0xff] }
 0x230   : > { %v1103_v27 = vadd.f32 %v2151_v23, %v1102_v26  ;;  %v2568_v23 = vpack.c.bf16 %v1453_v22, %v1452_v21  ;;  %v2598_v21 = vpack.c.bf16 %v1583_v19, %v1581_v18  ;;  %v1588_v22 = vld [vmem:[%s3541_s20 + $0xd8] sm:$0xff] }
 0x232   : > { %2404 = vmatpush3.msra.mxu1 %v1103_v27 }
 0x233   : > { %2408 = vmatprep.subr.mxu1 %v3083_v12 }
 0x2e7   : > { %v1177_v38 = vpop.f32.mrb[4].mxu0 }
 0x2e8   : > { %v1251_v40 = vmul.f32 0.17677669, %v1177_v38  ;;  %v2397_v41 = vpop.f32.mrb[5].mxu0 }
 0x2e9   : > { %v1561_v41 = vld [vmem:[%s3541_s20] sm:$0xff] }
 0x2ea   : > { %v1267_v42 = vsel %vm1265_vm3, 1e-09, %v1251_v40  ;;  %v1562_v40 = vld [vmem:[%s3541_s20 + $0x8] sm:$0xff] }
 0x2eb   : > { %v1247_v43 = vpop.f32.mrb[6].mxu0  ;;  %v1270_v44 = vsel %vm1269_vm4, %v1267_v42, -inf }
 0x2ec   : > { %v1252_v45 = vmul.f32 0.17677669, %v1247_v43  ;;  %1271 = vmax.xlane.f32.xlu0 %v1270_v44  ;;  %v2402_v46 = vpop.f32.mrb[7].mxu0  ;;  %v1563_v43 = vld [vmem:[%s3541_s20 + $0x10] sm:$0xff]  ;;  %v1566_v44 = vld [vmem:[%s3541_s20 + $0x28] sm:$0xff] }
 0x2ed   : > { %v2578_v46 = vpack.c.bf16 %v1563_v43, %v1561_v41  ;;  %v1688_v43 = vld [vmem:[%s3578_s2 + $0x10] sm:$0xff] }
 0x2ee   : > { %v1268_v47 = vsel %vm1266_vm5, 1e-09, %v1252_v45  ;;  %v1568_v45 = vld [vmem:[%s3541_s20 + $0x38] sm:$0xff] }
 0x2ef   : > { %v1273_v48 = vsel %vm1269_vm4, %v1268_v47, -inf }
 0x2f0   : > { %1274 = vmax.xlane.f32.xlu0 %v1273_v48  ;;  %v1565_v48 = vld [vmem:[%s3541_s20 + $0x20] sm:$0xff] }
 0x379   : > { %v1272_v49 = vpop.xlane.xlu0 %1271 }
 0x37a   : > { %v1276_v50 = vsub.f32 %v1267_v42, %v1272_v49  ;;  %v1567_v49 = vld [vmem:[%s3541_s20 + $0x30] sm:$0xff] }
 0x37c   : > { %v1278_v51 = vmul.f32 1.442695, %v1276_v50  ;;  %v1570_v50 = vld [vmem:[%s3541_s20 + $0x48] sm:$0xff] }
 0x37d   : > { %v1275_v52 = vpop.xlane.xlu0 %1274 }
 0x37e   : > { %2738 = vpow2.f32 %v1278_v51  ;;  %v1277_v53 = vsub.f32 %v1268_v47, %v1275_v52  ;;  %v2580_v47 = vpack.c.bf16 %v1568_v45, %v1566_v44  ;;  %v1572_v51 = vld [vmem:[%s3541_s20 + $0x58] sm:$0xff]  ;;  %v2582_v52 = vpack.c.bf16 %v1567_v49, %v1565_v48  ;;  %v1706_v45 = vld [vmem:[%s3578_s2 + $0xa0] sm:$0xff] }
 0x37f   : > { %v1689_v44 = vld [vmem:[%s3578_s2 + $0x18] sm:$0xff]  ;;  %v1690_v49 = vld [vmem:[%s3578_s2 + $0x20] sm:$0xff] }
 0x380   : > { %v1280_v54 = vmul.f32 1.442695, %v1277_v53  ;;  %v2584_v53 = vpack.c.bf16 %v1572_v51, %v1570_v50  ;;  %v1691_v50 = vld [vmem:[%s3578_s2 + $0x28] sm:$0xff]  ;;  %v1708_v51 = vld [vmem:[%s3578_s2 + $0xb0] sm:$0xff] }
 0x382   : > { %2740 = vpow2.f32 %v1280_v54  ;;  %v1569_v54 = vld [vmem:[%s3541_s20 + $0x40] sm:$0xff] }
 0x388   : > { %v2739_v55 = vpop.eup %2738 }
 0x389   : > { %v1282_v57 = vsel %vm1269_vm4, %v2739_v55, 0.0 }
 0x38a   : > { %1283 = vadd.xlane.f32.xlu1 %v1282_v57  ;;  %v1574_v57 = vld [vmem:[%s3541_s20 + $0x68] sm:$0xff] }
 0x38c   : > { %v2741_v58 = vpop.eup %2740 }
 0x38d   : > { %v1285_v59 = vsel %vm1269_vm4, %v2741_v58, 0.0 }
 0x38e   : > { %1286 = vadd.xlane.f32.xlu1 %v1285_v59 }
 0x417   : > { %v1284_v60 = vpop.xlane.xlu1 %1283 }
 0x418   : > { %2742 = vrcp.f32 %v1284_v60 }
 0x41b   : > { %v1287_v61 = vpop.xlane.xlu1 %1286 }
 0x41c   : > { %2744 = vrcp.f32 %v1287_v61  ;;  %v1573_v61 = vld [vmem:[%s3541_s20 + $0x60] sm:$0xff] }
 0x41d   : > { %v2590_v63 = vpack.c.bf16 %v1575_v62, %v1573_v61  ;;  %v1694_v62 = vld [vmem:[%s3578_s2 + $0x40] sm:$0xff] }
 0x422   : > { %v2743_v0 = vpop.eup %2742 }
 0x423   : > { %v1289_v1 = vmul.f32 %v2743_v0, %v2739_v55  ;;  %v1571_v55 = vld [vmem:[%s3541_s20 + $0x50] sm:$0xff] }
 0x424   : > { %v2586_v59 = vpack.c.bf16 %v1571_v55, %v1569_v54  ;;  %v1692_v55 = vld [vmem:[%s3578_s2 + $0x30] sm:$0xff] }
 0x425   : > { %1826 = vst.msk [vmem:[%s3580_s6] sm:$0xff] %vm1269_vm4, %v1289_v1  ;;  %2406 = vmatmul.mubr.msk.f32.vlgmr.msra.gmra.mrb[2].mxu1 %vm1269_vm4, %v1289_v1 }
 0x426   : > { %v2745_v5 = vpop.eup %2744  ;;  %2409 = vmatpush3.msra.mxu1 %v1108_v25  ;;  %2410 = vmatprep.mubr.msk.f32.mxu1 %vm3084_vm0, %v3083_v12  ;;  %v1455_v25 = vld [vmem:[%s3539_s22 + $0x78] sm:$0xff] }
 0x427   : > { %v1291_v6 = vmul.f32 %v2745_v5, %v2741_v58  ;;  %2545 = vmatprep.subr.bf16.mxu1 %v2544_v2  ;;  %v2572_v26 = vpack.c.bf16 %v1455_v25, %v1454_v24  ;;  %v1576_v58 = vld [vmem:[%s3541_s20 + $0x78] sm:$0xff]  ;;  %v1587_v24 = vld [vmem:[%s3541_s20 + $0xd0] sm:$0xff] }
 0x428   : > { %v2588_v60 = vpack.c.bf16 %v1576_v58, %v1574_v57  ;;  %v1693_v57 = vld [vmem:[%s3578_s2 + $0x38] sm:$0xff]  ;;  %v1710_v58 = vld [vmem:[%s3578_s2 + $0xc0] sm:$0xff] }
 0x429   : > { %1827 = vst.msk [vmem:[%s3580_s6 + $0x8] sm:$0xff] %vm1269_vm4, %v1291_v6  ;;  %2411 = vmatmul.mubr.msk.f32.vlgmr.msra.gmra.mrb[4].mxu1 %vm1269_vm4, %v1291_v6 }
 0x42a   : > { %2547 = vmatpush3.bf16.msra.mxu1 %v2544_v2 }
 0x42b   : > { %2549 = vmatprep.subr.bf16.mxu1 %v2548_v7 }
 0x42e   : > { %2551 = vmatpush3.bf16.msra.mxu1 %v2548_v7 }
 0x42f   : > { %2553 = vmatprep.subr.bf16.mxu1 %v2552_v10 }
 0x432   : > { %2555 = vmatpush3.bf16.msra.mxu1 %v2552_v10  ;;  %v2592_v10 = vpack.c.bf16 %v1580_v9, %v1578_v8  ;;  %v1714_v8 = vld [vmem:[%s3578_s2 + $0xe0] sm:$0xff]  ;;  %v1715_v9 = vld [vmem:[%s3578_s2 + $0xe8] sm:$0xff] }
 0x433   : > { %2557 = vmatprep.subr.bf16.mxu1 %v2556_v14 }
 0x436   : > { %2559 = vmatpush3.bf16.msra.mxu1 %v2556_v14  ;;  %v2594_v14 = vpack.c.bf16 %v1579_v13, %v1577_v11  ;;  %v2632_v11 = vpack.c.bf16 %v1715_v9, %v1714_v8 }
 0x437   : > { %2561 = vmatprep.subr.bf16.mxu1 %v2560_v17 }
 0x43a   : > { %2563 = vmatpush3.bf16.msra.mxu1 %v2560_v17  ;;  %v2596_v17 = vpack.c.bf16 %v1584_v16, %v1582_v15 }
 0x43b   : > { %2565 = vmatprep.subr.bf16.mxu1 %v2564_v20 }
 0x43e   : > { %2567 = vmatpush3.bf16.msra.mxu1 %v2564_v20  ;;  %v1586_v20 = vld [vmem:[%s3541_s20 + $0xc8] sm:$0xff] }
 0x43f   : > { %2569 = vmatprep.subr.bf16.mxu1 %v2568_v23  ;;  %v2600_v25 = vpack.c.bf16 %v1588_v22, %v1586_v20 }
 0x442   : > { %2571 = vmatpush3.bf16.msra.mxu1 %v2568_v23  ;;  %v1585_v23 = vld [vmem:[%s3541_s20 + $0xc0] sm:$0xff] }
 0x443   : > { %2573 = vmatprep.subr.bf16.mxu1 %v2572_v26 }
 0x446   : > { %2575 = vmatpush3.bf16.msra.mxu1 %v2572_v26  ;;  %v1590_v26 = vld [vmem:[%s3541_s20 + $0xe8] sm:$0xff] }
 0x4f8   : > { %v1361_v27 = vpop.f32.mrb[2].mxu1 }
 0x4f9   : > { %v1438_v29 = vadd.f32 %v1361_v27, %v3602_v28  ;;  %v2407_v30 = vpop.f32.mrb[3].mxu1  ;;  %v1592_v27 = vld [vmem:[%s3541_s20 + $0xf8] sm:$0xff] }
 0x4fa   : > { %v2604_v30 = vpack.c.bf16 %v1592_v27, %v1590_v26  ;;  %v1716_v26 = vld [vmem:[%s3578_s2 + $0xf0] sm:$0xff]  ;;  %v1717_v27 = vld [vmem:[%s3578_s2 + $0xf8] sm:$0xff] }
 0x4fb   : > { %2445 = vmatprep.mubr.f32.mxu1 %v1438_v29  ;;  %v2602_v29 = vpack.c.bf16 %v1587_v24, %v1585_v23  ;;  %v1698_v23 = vld [vmem:[%s3578_s2 + $0x60] sm:$0xff]  ;;  %v1699_v24 = vld [vmem:[%s3578_s2 + $0x68] sm:$0xff] }
 0x4fc   : > { %v1434_v32 = vpop.f32.mrb[4].mxu1 }
 0x4fd   : > { %v1439_v34 = vadd.f32 %v1434_v32, %v3624_v56  ;;  %v2412_v35 = vpop.f32.mrb[5].mxu1  ;;  %v1564_v56 = vld [vmem:[%s3541_s20 + $0x18] sm:$0xff]  ;;  %v1589_v32 = vld [vmem:[%s3541_s20 + $0xe0] sm:$0xff] }
 0x4fe   : > { %v2576_v42 = vpack.c.bf16 %v1564_v56, %v1562_v40  ;;  %v1704_v40 = vld [vmem:[%s3578_s2 + $0x90] sm:$0xff]  ;;  %v1705_v56 = vld [vmem:[%s3578_s2 + $0x98] sm:$0xff] }
 0x4ff   : > { %2446 = vmatmul.mubr.f32.vlgmr.msra.gmra.mrb[6].mxu1 %v1439_v34  ;;  %v1591_v34 = vld [vmem:[%s3541_s20 + $0xf0] sm:$0xff] }
 0x500   : > { %2577 = vmatprep.subr.bf16.mxu0 %v2576_v42  ;;  %v2606_v35 = vpack.c.bf16 %v1591_v34, %v1589_v32  ;;  %v2612_v42 = vpack.c.bf16 %v1705_v56, %v1704_v40  ;;  %v1701_v32 = vld [vmem:[%s3578_s2 + $0x78] sm:$0xff] }
 0x501   : > { %2579 = vmatpush1.bf16.msra.mxu0 %v2578_v46  ;;  %v1707_v46 = vld [vmem:[%s3578_s2 + $0xa8] sm:$0xff] }
 0x502   : > { %2581 = vmatprep.subr.bf16.mxu0 %v2580_v47  ;;  %v2614_v47 = vpack.c.bf16 %v1689_v44, %v1688_v43  ;;  %v2616_v48 = vpack.c.bf16 %v1707_v46, %v1706_v45 }
 0x505   : > { %2583 = vmatpush1.bf16.msra.mxu0 %v2582_v52  ;;  %v1709_v52 = vld [vmem:[%s3578_s2 + $0xb8] sm:$0xff] }
 0x506   : > { %2585 = vmatprep.subr.bf16.mxu0 %v2584_v53  ;;  %v2618_v53 = vpack.c.bf16 %v1691_v50, %v1690_v49  ;;  %v2620_v54 = vpack.c.bf16 %v1709_v52, %v1708_v51 }
 0x509   : > { %2587 = vmatpush1.bf16.msra.mxu0 %v2586_v59  ;;  %v1711_v59 = vld [vmem:[%s3578_s2 + $0xc8] sm:$0xff] }
 0x50a   : > { %2589 = vmatprep.subr.bf16.mxu0 %v2588_v60  ;;  %v2622_v60 = vpack.c.bf16 %v1693_v57, %v1692_v55  ;;  %v2624_v61 = vpack.c.bf16 %v1711_v59, %v1710_v58 }
 0x50d   : > { %2591 = vmatpush1.bf16.msra.mxu0 %v2590_v63  ;;  %v1695_v63 = vld [vmem:[%s3578_s2 + $0x48] sm:$0xff] }
 0x50e   : > { %2593 = vmatprep.subr.bf16.mxu0 %v2592_v10 }
 0x511   : > { %2595 = vmatpush1.bf16.msra.mxu0 %v2594_v14 }
 0x512   : > { %2597 = vmatprep.subr.bf16.mxu0 %v2596_v17 }
 0x515   : > { %2599 = vmatpush1.bf16.msra.mxu0 %v2598_v21 }
 0x516   : > { %2601 = vmatprep.subr.bf16.mxu0 %v2600_v25  ;;  %v2634_v25 = vpack.c.bf16 %v1699_v24, %v1698_v23 }
 0x519   : > { %2603 = vmatpush1.bf16.msra.mxu0 %v2602_v29  ;;  %v2636_v29 = vpack.c.bf16 %v1717_v27, %v1716_v26 }
 0x51a   : > { %2605 = vmatprep.subr.bf16.mxu0 %v2604_v30  ;;  %v1700_v30 = vld [vmem:[%s3578_s2 + $0x70] sm:$0xff] }
 0x51b   : > { %v2638_v34 = vpack.c.bf16 %v1701_v32, %v1700_v30 }
 0x51d   : > { %2607 = vmatpush1.bf16.msra.mxu0 %v2606_v35  ;;  %v1601_v35 = vsub.s32 1, %v3671_v31 }
 0x5d2   : > { %v2447_v37 = vpop.f32.mrb[6].mxu1 }
 0x5d3   : > { %v1535_v28 = vadd.f32 %v2447_v37, %v2154_v36  ;;  %v1529_v38 = vpop.f32.mrb[7].mxu1  ;;  %v1703_v37 = vld [vmem:[%s3578_s2 + $0x88] sm:$0xff] }
 0x5d4   : > { %v1530_v39 = vadd.f32 %v2154_v36, %v1529_v38  ;;  %v1702_v36 = vld [vmem:[%s3578_s2 + $0x80] sm:$0xff] }
 0x5d5   : > { %1540 = vadd.xlane.f32.xlu1 %v1535_v28  ;;  %v2608_v38 = vpack.c.bf16 %v1703_v37, %v1702_v36 }
 0x5d6   : > { %1538 = vadd.xlane.f32.xlu0 %v1530_v39 }
 0x5d7   : > { %2609 = vmatprep.subr.bf16.mxu1 %v2608_v38 }
 0x662   : > { %v1541_v0 = vpop.xlane.xlu1 %1540 }
 0x663   : > { %v1544_v1 = vmul.f32 0.0078125, %v1541_v0  ;;  %v1539_v2 = vpop.xlane.xlu0 %1538  ;;  %v1712_v0 = vld [vmem:[%s3578_s2 + $0xd0] sm:$0xff] }
 0x664   : > { %v1543_v3 = vmul.f32 0.0078125, %v1539_v2  ;;  %v2626_v2 = vpack.c.bf16 %v1695_v63, %v1694_v62 }
 0x665   : > { %v3732_v4 = vsub.f32 %v1535_v28, %v1544_v1  ;;  %v1686_v28 = vld [vmem:[%s3578_s2] sm:$0xff]  ;;  %v1713_v1 = vld [vmem:[%s3578_s2 + $0xd8] sm:$0xff] }
 0x666   : > { %v3734_v5 = vsub.f32 %v1530_v39, %v1543_v3  ;;  %v1687_v39 = vld [vmem:[%s3578_s2 + $0x8] sm:$0xff]  ;;  %v2628_v3 = vpack.c.bf16 %v1713_v1, %v1712_v0 }
 0x667   : > { %v1548_v6 = vmul.f32 %v3732_v4, %v3732_v4  ;;  %v2610_v41 = vpack.c.bf16 %v1687_v39, %v1686_v28 }
 0x668   : > { %v1547_v7 = vmul.f32 %v3734_v5, %v3734_v5 }
 0x669   : > { %1551 = vadd.xlane.f32.xlu1 %v1548_v6  ;;  %2611 = vmatpush3.bf16.msra.mxu1 %v2610_v41  ;;  %v1696_v6 = vld [vmem:[%s3578_s2 + $0x50] sm:$0xff] }
 0x66a   : > { %1549 = vadd.xlane.f32.xlu0 %v1547_v7  ;;  %2613 = vmatprep.subr.bf16.mxu1 %v2612_v42  ;;  %v1697_v7 = vld [vmem:[%s3578_s2 + $0x58] sm:$0xff]  ;;  %s1855_s2 = sshll.u32 %s3580_s6, 4  ;;  %s3806_s2 = int_to_ptr.vmem [resolvable:$true] %s1855_s2 }
 0x66b   : > { %v2630_v10 = vpack.c.bf16 %v1697_v7, %v1696_v6  ;;  %s2962_s12 = scalar_lea.vmem %s3806_s2, 256  ;;  %p2969_p5 = scmp.lt.s32.totalorder %s3806_s2, %s2967_s18 }
 0x66c   : > { %p2963_p3 = scmp.ne.s32.totalorder %s3806_s2, %s2962_s12  ;;  %p2970_p7 = scmp.lt.s32.totalorder %s2968_s11, %s2962_s12 }
 0x66d   : > { %2615 = vmatpush3.bf16.msra.mxu1 %v2614_v47 }
 0x66e   : > { %2617 = vmatprep.subr.bf16.mxu1 %v2616_v48  ;;  %p2964_p9 = pnand %p2963_p3, %p3994_p6  ;;  %p2971_p2 = por %p2970_p7, %p2969_p5 }
 0x670   : > { %p2965_p10 = pneg %p2964_p9 }
 0x671   : > { %2619 = vmatpush3.bf16.msra.mxu1 %v2618_v53 }
 0x672   : > { %2621 = vmatprep.subr.bf16.mxu1 %v2620_v54  ;;  %p2972_p0 = pnand %p2971_p2, %p2965_p10 }
 0x675   : > { %2623 = vmatpush3.bf16.msra.mxu1 %v2622_v60 }
 0x676   : > { %2625 = vmatprep.subr.bf16.mxu1 %v2624_v61 }
 0x679   : > { %2627 = vmatpush3.bf16.msra.mxu1 %v2626_v2 }
 0x67a   : > { %2629 = vmatprep.subr.bf16.mxu1 %v2628_v3 }
 0x67d   : > { %2631 = vmatpush3.bf16.msra.mxu1 %v2630_v10 }
 0x67e   : > { %2633 = vmatprep.subr.bf16.mxu1 %v2632_v11 }
 0x681   : > { %2635 = vmatpush3.bf16.msra.mxu1 %v2634_v25 }
 0x682   : > { %2637 = vmatprep.subr.bf16.mxu1 %v2636_v29 }
 0x685   : > { %2639 = vmatpush3.bf16.msra.mxu1 %v2638_v34 }
 0x6f6   : > { %v1552_v13 = vpop.xlane.xlu1 %1551 }
 0x6f7   : > { %v1554_v14 = vmul.f32 0.0078125, %v1552_v13  ;;  %v1550_v15 = vpop.xlane.xlu0 %1549 }
 0x6f8   : > { %v1553_v16 = vmul.f32 0.0078125, %v1550_v15 }
 0x6f9   : > { %v1556_v17 = vadd.f32 1e-05, %v1554_v14 }
 0x6fa   : > { %v1555_v18 = vadd.f32 1e-05, %v1553_v16 }
 0x6fc   : > { %2746 = vrsqrt.f32 %v1555_v18 }
 0x6fd   : > { %2748 = vrsqrt.f32 %v1556_v17 }
 0x706   : > { %v2747_v19 = vpop.eup %2746 }
 0x707   : > { %v1559_v20 = vmul.f32 %v2747_v19, %v3734_v5  ;;  %v2749_v21 = vpop.eup %2748  ;;  %v1593_v5 = vld [vmem:[%s3576_s30] sm:$0x3] }
 0x708   : > { %v1560_v22 = vmul.f32 %v2749_v21, %v3732_v4  ;;  %v1602_v36 = vrot.slane %v1593_v5, %v1601_v35 }
 0x709   : > { %1670 = vmatmul.mubr.f32.vlgmr.msra.gmra.mrb[8].mxu0 %v1559_v20 }
 0x70a   : > { %1675 = vmatprep.mubr.f32.mxu0 %v3083_v12  ;;  %v1598_v12 = vrot.slane %v1593_v5, %v3677_v33  ;;  %v2155_v33 = vld [vmem:[%s804_s8] ss:$0 sm:$0xff]  ;;  %s2169_s8 = sshll.u32 %s3350_s15, 8 }
 0x70b   : > { %s3803_s5 = scalar_lea.hbm %s3993_s4, %s2169_s8 }
 0x70d   : > { %1676 = vmatmul.mubr.f32.gmra.mrb[10].mxu0 %v1560_v22 }
 0x7dc   : > { %v1671_v4 = vpop.f32.mrb[8].mxu0 }
 0x7dd   : > { %v1672_v37 = vadd.f32 %v1671_v4, %v1598_v12  ;;  %v1673_v28 = vpop.f32.mrb[9].mxu0 }
 0x7de   : > { %v1674_v38 = vadd.f32 %v1673_v28, %v1602_v36 }
 0x7df   : > { %v1682_v56 = vmax.f32 %v1672_v37, 0.0 }
 0x7e0   : > { %v1683_v39 = vmax.f32 %v1674_v38, 0.0  ;;  %v1677_v40 = vpop.f32.mrb[10].mxu0 }
 0x7e1   : > { %v1678_v41 = vadd.f32 %v1677_v40, %v1598_v12  ;;  %v1679_v42 = vpop.f32.mrb[11].mxu0 }
 0x7e2   : > { %v1680_v43 = vadd.f32 %v1679_v42, %v1602_v36  ;;  %1789 = vmatprep.mubr.f32.mxu1 %v1683_v39 }
 0x7e3   : > { %1790 = vmatmul.mubr.f32.vlgmr.msra.gmra.mrb[8].mxu1 %v1682_v56  ;;  %v1684_v45 = vmax.f32 %v1678_v41, 0.0 }
 0x7e4   : > { %v1685_v44 = vmax.f32 %v1680_v43, 0.0 }
 0x7e6   : > { %1794 = vmatprep.mubr.f32.mxu1 %v1685_v44 }
 0x7e7   : > { %1795 = vmatmul.mubr.f32.gmra.mrb[10].mxu1 %v1684_v45 }
 0x8b6   : > { %v2282_v31 = vpop.f32.mrb[8].mxu1 }
 0x8b7   : > { %v2283_v46 = vpop.f32.mrb[9].mxu1 }
 0x8b8   : > { %v2284_v47 = vadd.f32 %v2283_v46, %v2282_v31 }
 0x8ba   : > { %v1792_v48 = vadd.f32 %v2284_v47, %v2155_v33  ;;  %v2285_v49 = vpop.f32.mrb[10].mxu1 }
 0x8bb   : > { %v2286_v50 = vpop.f32.mrb[11].mxu1 }
 0x8bc   : > { %v2287_v51 = vadd.f32 %v2286_v50, %v2285_v49  ;;  %v1800_v52 = vadd.f32 %v1792_v48, %v1559_v20 }
 0x8be   : > { %v1797_v53 = vadd.f32 %v2287_v51, %v2155_v33  ;;  %1802 = vadd.xlane.f32.xlu0 %v1800_v52 }
 0x8c0   : > { %v1801_v54 = vadd.f32 %v1797_v53, %v1560_v22 }
 0x8c2   : > { %1804 = vadd.xlane.f32.xlu1 %v1801_v54 }
 0x94b   : > { %v1803_v55 = vpop.xlane.xlu0 %1802 }
 0x94c   : > { %v1806_v57 = vmul.f32 0.0078125, %v1803_v55 }
 0x94e   : > { %v1808_v58 = vsub.f32 %v1800_v52, %v1806_v57 }
 0x94f   : > { %v1805_v59 = vpop.xlane.xlu1 %1804 }
 0x950   : > { %v1807_v60 = vmul.f32 0.0078125, %v1805_v59  ;;  %v1810_v61 = vmul.f32 %v1808_v58, %v1808_v58 }
 0x952   : > { %v1809_v62 = vsub.f32 %v1801_v54, %v1807_v60  ;;  %1812 = vadd.xlane.f32.xlu0 %v1810_v61 }
 0x954   : > { %v1811_v63 = vmul.f32 %v1809_v62, %v1809_v62 }
 0x956   : > { %1814 = vadd.xlane.f32.xlu1 %v1811_v63 }
 0x957   : > { %2975 = shalt.err (!%p2972_p0)
}
 0x958   : > { %s2976_s6 = scalar_lea.hbm %s3803_s5, 256  ;;  %s2980_s9 = scalar_lea.hbm %s3993_s4, 512 }
 0x959   : > { %p2977_p8 = scmp.ne.s32.totalorder %s3803_s5, %s2976_s6  ;;  %p2981_p1 = scmp.lt.u32.totalorder %s3803_s5, %s3993_s4 }
 0x95a   : > { %p2982_p13 = scmp.lt.u32.totalorder %s2980_s9, %s2976_s6  ;;  %p2984_p3 = scmp.lt.u32.totalorder %s2976_s6, %s3803_s5 }
 0x95b   : > { %p2978_p12 = pnand %p2977_p8, %p3994_p6 }
 0x95c   : > { %p2983_p11 = por %p2982_p13, %p2981_p1 }
 0x95d   : > { %p2979_p4 = pneg %p2978_p12 }
 0x95e   : > { %p2985_p9 = por %p2984_p3, %p2983_p11 }
 0x960   : > { %p2986_p10 = pnand %p2985_p9, %p2979_p4 }
 0x962   : > { %2989 = shalt.err (!%p2986_p10)
}
 0x963   : > { %s3087_s1 = smov 128   ;;  %s3088_s24 = smov 8  }
 0x964   : > { %2658 = dma.vmem_to_hbm [thread:$0]  (%p3994_p6), %s3806_s2, 256, %s3803_s5, %s1829_s0, %s3087_s1, %s3087_s1, %s3088_s24  }
 0x965   : > { %s3089_s16 = smov [#allocation14]   ;;  %p3995_p5 = scmp.eq.s32.totalorder %s3350_s15, 1 }
 0x966   : > { %s1839_s22 = sshll.u32 %s3089_s16, 4  ;;  %s1840_s22 = int_to_ptr.vmem [resolvable:$true] %s1839_s22 }
 0x967   : > { %s2990_s17 = scalar_lea.vmem %s1840_s22, 256  ;;  %p2997_p0 = scmp.lt.s32.totalorder %s1840_s22, %s1840_s22 }
 0x968   : > { %p2991_p6 = scmp.ne.s32.totalorder %s1840_s22, %s2990_s17  ;;  %p2998_p8 = scmp.lt.s32.totalorder %s2990_s17, %s2990_s17 }
 0x96a   : > { %p2992_p7 = pnand %p2991_p6, %p3995_p5  ;;  %p2999_p12 = por %p2998_p8, %p2997_p0 }
 0x96c   : > { %p2993_p2 = pneg %p2992_p7 }
 0x96e   : > { %p3000_p4 = pnand %p2999_p12, %p2993_p2 }
 0x9df   : > { %v1813_v0 = vpop.xlane.xlu0 %1812 }
 0x9e0   : > { %v1816_v1 = vmul.f32 0.0078125, %v1813_v0 }
 0x9e2   : > { %v1818_v2 = vadd.f32 1e-05, %v1816_v1 }
 0x9e3   : > { %v1815_v3 = vpop.xlane.xlu1 %1814 }
 0x9e4   : > { %2750 = vrsqrt.f32 %v1818_v2  ;;  %v1817_v6 = vmul.f32 0.0078125, %v1815_v3 }
 0x9e6   : > { %v1819_v7 = vadd.f32 1e-05, %v1817_v6 }
 0x9e8   : > { %2752 = vrsqrt.f32 %v1819_v7 }
 0x9ee   : > { %v2751_v8 = vpop.eup %2750 }
 0x9ef   : > { %v1822_v9 = vmul.f32 %v2751_v8, %v1808_v58 }
 0x9f1   : > { %1824 = vst [vmem:[#allocation14] sm:$0xff] %v1822_v9 }
 0x9f2   : > { %v2753_v10 = vpop.eup %2752 }
 0x9f3   : > { %v1823_v11 = vmul.f32 %v2753_v10, %v1809_v62 }
 0x9f5   : > { %1825 = vst [vmem:[#allocation14 + $0x8] sm:$0xff] %v1823_v11 }
 0x9f6   : > { %3003 = shalt.err (!%p3000_p4)
}
 0x9f7   : > { %s3996_s20 = sld [smem:[#allocation45_spill]]  ;;  %p3998_p13 = pmov %p3995_p5 }
 0x9fd   : > { %s3997_s26 = smov %s3996_s20  ;;  %s3004_s23 = scalar_lea.hbm %s3996_s20, 256 }
 0x9fe   : > { %p3005_p1 = scmp.ne.s32.totalorder %s3997_s26, %s3004_s23  ;;  %p3010_p9 = scmp.lt.u32.totalorder %s3004_s23, %s3997_s26 }
 0xa00   : > { %p3006_p11 = pnand %p3005_p1, %p3998_p13 }
 0xa02   : > { %p3007_p3 = pneg %p3006_p11 }
 0xa04   : > { %p3012_p10 = pnand %p3010_p9, %p3007_p3 }
 0xa06   : > { %3015 = shalt.err (!%p3012_p10)
}
 0xa07   : > { %p3999_p6 = pmov %p3995_p5 }
 0xa09   : > { %2657 = dma.vmem_to_hbm [thread:$0]  (%p3999_p6), %s1840_s22, 256, %s3997_s26, [#allocation4], %s3087_s1, %s3087_s1, %s3088_s24  }
 0xa0a   : > { %3049 = dma.done.wait (%p3995_p5), [#allocation4], 256   ;;  %p4000_p7 = pmov %p3995_p5 }
 0xa0c   : > { %3051 = vsyncadd (%p4000_p7), [#allocation4], 4294967040 }
 0xa0d PF: > { %s4001_s0 = sld [smem:[#allocation23_spill]]  ;;  %s4002_s12 = sld [smem:[#allocation30_spill]] }
 0xa0e   : > { %s4003_s19 = sld [smem:[#allocation26_spill]] }
 0xa13   : > { %s1874_s18 = sand.u32 1, %s4001_s0   ;;  %p4004_p2 = scmp.ne.s32.totalorder %s4002_s12, 0 }
 0xa14   : > { %p4005_p0 = scmp.ge.s32.totalorder %s4003_s19, 2  ;;  %s1875_s11 = scalar_lea.sflag [#allocation16], %s1874_s18 }
 0xa16   : > { %p2686_p8 = pnand %p4005_p0, %p4004_p2 }
 0xa18   : > { %3053 = dma.done.wait (!%p2686_p8), %s1875_s11, 256  }
 0xa19   : > { %3055 = vsyncadd (!%p2686_p8), %s1875_s11, 4294967040  ;;  %s4006_s21 = sld [smem:[#allocation27_spill]]  ;;  %s4007_s18 = sld [smem:[#allocation24_spill]] }
 0xa1a   : > { %s4008_s19 = sld [smem:[#allocation25_spill]]  ;;  %s4009_s20 = sld [smem:[#allocation28_spill]] }
 0xa1f   : > { %p37_p12 = scmp.ge.s32.totalorder %s4006_s21, 4  }
 0xa21   :  { %39 = sbr.rel (!%p37_p12) target bundleno = 27 (0x1b), region = 216 }
 0xa28   :  { %1880 = vsyncpa [#allocation3], 1 }
 0xa29   :  { %1882 = vsyncpa [#allocation3 + $0x1], 1 }
 0xa2a   :  { %1883 = vsyncpa [#allocation6], 1 }
 0xa2b   :  { %1885 = vsyncpa [#allocation6 + $0x1], 1 }
 0xa2c   :  { %1886 = vsyncpa [#allocation9], 1 }
 0xa2d   :  { %1888 = vsyncpa [#allocation9 + $0x1], 1 }
 0xa2e   :  { %1889 = vsyncpa [#allocation12], 1 }
 0xa2f   :  { %1891 = vsyncpa [#allocation12 + $0x1], 1 }
 0xa30   :  { %1892 = vsyncpa [#allocation4], 1 }
 0xa31   :  { %1894 = vsyncpa [#allocation4 + $0x1], 1 }
 0xa32   :  { %1895 = vsyncpa [#allocation16], 1 }
 0xa33   :  { %1897 = vsyncpa [#allocation16 + $0x1], 1 }

</bundles_post_ra>
